<compile_context>
chip_gen: v5e
topology: v5e:2x2
jax: 0.10.0
libtpu: 0.0.40
codegen_flags: <defaults>
</compile_context>

<pallas_src>
import functools
import math

import jax
import jax.numpy as jnp
from jax.experimental import pallas as pl
from jax.experimental.pallas import tpu as pltpu


# ----------------------------------------------------------------------------
# Configuration
# ----------------------------------------------------------------------------
ATTRIBUTE_CONFIGS = [
    # (name, type, num_classes)
    ("color", "multiclass", 5),
    ("damage", "multilabel", 4),
    ("quality", "regression", 3),
]
FEATURE_DIM = 64        # scaled-down stand-in for efficientnet_v2_m's 1280
F_PAD = 128             # feature dim padded to full lane width in the tail
STEM_COUT = 16
BLK_COUT = 32
LANES = 128

_HEAD_STARTS = []
_off = 0
for _name, _typ, _ncls in ATTRIBUTE_CONFIGS:
    _HEAD_STARTS.append(_off)
    _off += _ncls
TOTAL_CLASSES = _off
assert TOTAL_CLASSES <= LANES

_COMPILER_PARAMS = pltpu.CompilerParams(
    dimension_semantics=("parallel",),      # shard 1-D grids across v7x's 2 TCs
    vmem_limit_bytes=32 * 1024 * 1024,      # explicit, <= v7x 64 MiB with headroom
)


def _round_up(x, m):
    return (x + m - 1) // m * m


# ----------------------------------------------------------------------------
# In-kernel math helpers (numerically stable; approx reciprocal on the EUP for
# internal SiLU activations, exact division for the final multilabel sigmoid)
# ----------------------------------------------------------------------------
def _sigmoid(y, approx=True):
    z = jnp.exp(-jnp.abs(y))                    # no overflow for large |y|
    denom = 1.0 + z
    inv = pl.reciprocal(denom, approx=True) if approx else 1.0 / denom
    return jnp.where(y >= 0, inv, z * inv)


def _silu(y):
    return y * _sigmoid(y, approx=True)


# ----------------------------------------------------------------------------
# Kernel 1: 3x3 / stride-2 conv + folded BN + SiLU, im2col fused in-kernel
# ----------------------------------------------------------------------------
def _conv3x3_kernel(ph_ref, w_ref, b_ref, o_ref, *, ho, wo, taps):
    """ph_ref: [4, Hh, Wh, Cp] bf16  stride-2 phase split of the padded image
       w_ref:  [9, Cp, Cout]   bf16  conv weights (BN scale folded, tap-major)
       b_ref:  [1, Cout]       f32   folded BN shift
       o_ref:  [Ho*Wo, Cout]   bf16  conv output (exactly Cout lanes, no pad)
    """
    x = ph_ref[...]                                   # one whole (tiny) image
    w = w_ref[...]
    cout = o_ref.shape[-1]
    acc = jnp.zeros((ho * wo, cout), jnp.float32)
    for t, (p, oy, ox) in enumerate(taps):            # 9 static taps, unrolled
        win = x[p, oy:oy + ho, ox:ox + wo, :]         # [Ho, Wo, Cp] contiguous
        win2 = win.reshape(ho * wo, win.shape[-1])    # [Ho*Wo, Cp]
        acc = acc + jnp.dot(win2, w[t], preferred_element_type=jnp.float32)
    o_ref[...] = _silu(acc + b_ref[...]).astype(o_ref.dtype)


def _phase_split_s2(x_nhwc, pad):
    """Pad spatially, then split into the 4 stride-2 phases.

    Returns [N, 4, Hp/2, Wp/2, C]; phase index = (dy%2)*2 + (dx%2), so tap
    (dy,dx) of a stride-2 3x3 conv reads phase[(dy%2)*2+(dx%2)][dy//2:, dx//2:].
    This is a ~1x HBM copy (fused with the pad) instead of a 9x im2col blowup.
    """
    n, h, w, c = x_nhwc.shape
    xp = jnp.pad(x_nhwc, ((0, 0), (pad, pad), (pad, pad), (0, 0)))
    hp, wp = h + 2 * pad, w + 2 * pad
    assert hp % 2 == 0 and wp % 2 == 0, "even padded spatial dims required"
    ph = xp.reshape(n, hp // 2, 2, wp // 2, 2, c).transpose(0, 2, 4, 1, 3, 5)
    return ph.reshape(n, 4, hp // 2, wp // 2, c)


def conv3x3_bn_silu(x_nhwc, layer, *, stride=2, pad=1):
    """3x3 conv (stride 2, pad 1) + folded BN + SiLU; one image per grid step."""
    assert stride == 2 and pad == 1
    n, h, w, c = x_nhwc.shape
    _, cin_pad, cout = layer["w"].shape               # static shapes, jit-safe
    if cin_pad > c:                                   # e.g. stem: 3 -> 8 channels
        x_nhwc = jnp.pad(x_nhwc, ((0, 0), (0, 0), (0, 0), (0, cin_pad - c)))
    ho = (h + 2 * pad - 3) // stride + 1
    wo = (w + 2 * pad - 3) // stride + 1

    phases = _phase_split_s2(x_nhwc.astype(jnp.bfloat16), pad)
    _, _, hh, wh, cp = phases.shape
    taps = tuple(((dy % 2) * 2 + (dx % 2), dy // 2, dx // 2)
                 for dy in range(3) for dx in range(3))
    kernel = functools.partial(_conv3x3_kernel, ho=ho, wo=wo, taps=taps)

    out = pl.pallas_call(
        kernel,
        grid=(n,),                                    # >=2 steps for batch>=2
        in_specs=[
            pl.BlockSpec((None, 4, hh, wh, cp), lambda i: (i, 0, 0, 0, 0)),
            pl.BlockSpec((9, cp, cout), lambda i: (0, 0, 0)),
            pl.BlockSpec((1, cout), lambda i: (0, 0)),
        ],
        out_specs=pl.BlockSpec((None, ho * wo, cout), lambda i: (i, 0, 0)),
        out_shape=jax.ShapeDtypeStruct((n, ho * wo, cout), jnp.bfloat16),
        compiler_params=_COMPILER_PARAMS,
    )(phases, layer["w"], layer["b"])
    return out.reshape(n, ho, wo, cout)               # free (metadata-only)


# ----------------------------------------------------------------------------
# Kernel 2: fused 1x1 head-conv + BN + SiLU + GAP (VPU/XLU) + all heads
# ----------------------------------------------------------------------------
def _tail_kernel(xs_ref, whc_ref, bhc_ref, wh_ref, bh_ref, o_ref, *,
                 hw, head_layout):
    """xs_ref:  [BT*HW, C2] bf16  spatial activations for one batch tile
       whc_ref: [C2, 128]   bf16  1x1 conv weights (BN folded, F padded to 128)
       bhc_ref: [1, 128]    f32   folded BN bias
       wh_ref:  [128, 128]  bf16  packed head weights (all heads, zero-padded)
       bh_ref:  [1, 128]    f32   packed head biases
       o_ref:   [BT, 128]   f32   packed per-head activations (lane-dense)
    """
    bt = o_ref.shape[0]
    y = jnp.dot(xs_ref[...], whc_ref[...], preferred_element_type=jnp.float32)
    y = _silu(y + bhc_ref[...])                                  # [BT*HW, 128]
    # Global average pool on the VPU/XLU (no tiny-f32 MXU matmul).
    feats = jnp.sum(y.reshape(bt, hw, F_PAD), axis=1) * (1.0 / hw)   # [BT, 128]
    logits = jnp.dot(feats.astype(jnp.bfloat16), wh_ref[...],
                     preferred_element_type=jnp.float32) + bh_ref[...]
    # PyTorch head = Dropout -> Linear -> SiLU; softmax/sigmoid applied to that.
    h = _silu(logits)                                            # [BT, 128]

    col = jax.lax.broadcasted_iota(jnp.int32, h.shape, 1)
    out = jnp.zeros_like(h)
    for start, size, mode in head_layout:
        mask = (col >= start) & (col < start + size)
        if mode == "multiclass":                 # masked softmax over this head
            hm = jnp.where(mask, h, -jnp.inf)
            m = jnp.max(hm, axis=1, keepdims=True)
            e = jnp.exp(hm - m)                  # masked cols -> exp(-inf) = 0
            vals = e / jnp.sum(e, axis=1, keepdims=True)
        elif mode == "multilabel":
            vals = _sigmoid(h, approx=False)     # exact division for outputs
        else:                                    # regression: raw head output
            vals = h
        out = jnp.where(mask, vals, out)
    o_ref[...] = out


def fused_tail(x_nhwc, headconv, heads):
    n, h, w, c2 = x_nhwc.shape
    hw = h * w
    # Batch tile: multiple of 8, grows with batch, always >= 2 grid steps so the
    # second v7x TensorCore is not idle.
    bt = min(32, max(8, _round_up(n, 8) // 2))
    bt = _round_up(bt, 8)
    n_pad = _round_up(n, bt)
    if n_pad // bt < 2:
        n_pad = 2 * bt

    xs = x_nhwc.astype(jnp.bfloat16).reshape(n * hw, c2)
    if n_pad > n:
        xs = jnp.pad(xs, ((0, (n_pad - n) * hw), (0, 0)))

    head_layout = tuple(
        (start, ncls, typ)
        for (_name, typ, ncls), start in zip(ATTRIBUTE_CONFIGS, _HEAD_STARTS))
    kernel = functools.partial(_tail_kernel, hw=hw, head_layout=head_layout)

    out = pl.pallas_call(
        kernel,
        grid=(n_pad // bt,),
        in_specs=[
            pl.BlockSpec((bt * hw, c2), lambda i: (i, 0)),
            pl.BlockSpec((c2, F_PAD), lambda i: (0, 0)),
            pl.BlockSpec((1, F_PAD), lambda i: (0, 0)),
            pl.BlockSpec((F_PAD, LANES), lambda i: (0, 0)),
            pl.BlockSpec((1, LANES), lambda i: (0, 0)),
        ],
        out_specs=pl.BlockSpec((bt, LANES), lambda i: (i, 0)),
        out_shape=jax.ShapeDtypeStruct((n_pad, LANES), jnp.float32),
        compiler_params=_COMPILER_PARAMS,
    )(xs, headconv["w"], headconv["b"], heads["w"], heads["b"])

    return {name: out[:n, start:start + ncls]
            for (name, _typ, ncls), start in zip(ATTRIBUTE_CONFIGS, _HEAD_STARTS)}


# ----------------------------------------------------------------------------
# Parameters: torch-like init, then host-side packing (BN fold, pad, bf16)
# ----------------------------------------------------------------------------
def init_params(key):
    keys = jax.random.split(key, 8)

    def conv_w(k, kh, kw, cin, cout):
        std = math.sqrt(2.0 / (kh * kw * cin))
        return jax.random.normal(k, (kh, kw, cin, cout), jnp.float32) * std

    def xavier(k, out_dim, in_dim):
        bound = math.sqrt(6.0 / (in_dim + out_dim))
        return jax.random.uniform(k, (out_dim, in_dim), jnp.float32,
                                  minval=-bound, maxval=bound)

    params = {
        "stem":     {"w": conv_w(keys[0], 3, 3, 3, STEM_COUT),
                     "scale": jnp.ones((STEM_COUT,), jnp.float32),
                     "shift": jnp.zeros((STEM_COUT,), jnp.float32)},
        "blk":      {"w": conv_w(keys[1], 3, 3, STEM_COUT, BLK_COUT),
                     "scale": jnp.ones((BLK_COUT,), jnp.float32),
                     "shift": jnp.zeros((BLK_COUT,), jnp.float32)},
        "headconv": {"w": conv_w(keys[2], 1, 1, BLK_COUT, FEATURE_DIM),
                     "scale": jnp.ones((FEATURE_DIM,), jnp.float32),
                     "shift": jnp.zeros((FEATURE_DIM,), jnp.float32)},
        "heads": {},
    }
    # Classifier heads: xavier_uniform weight, zero bias (as in _initialize_heads)
    for i, (name, _typ, ncls) in enumerate(ATTRIBUTE_CONFIGS):
        params["heads"][name] = {"w": xavier(keys[3 + i], ncls, FEATURE_DIM),
                                 "b": jnp.zeros((ncls,), jnp.float32)}
    return params


def pack_params(params):
    """Fold BN scale into conv weights, pad input channels to a multiple of 8,
    pad the tail's feature dim / head columns to 128 lanes, cast MXU operands
    to bf16.  Only jnp arrays go in the pytree (shapes carry the static info)."""
    def pack_conv3x3(layer):
        kh, kw, cin, cout = layer["w"].shape
        cin_pad = _round_up(cin, 8)
        w = layer["w"] * layer["scale"]                 # fold BN scale (per-cout)
        if cin_pad > cin:
            w = jnp.pad(w, ((0, 0), (0, 0), (0, cin_pad - cin), (0, 0)))
        w = w.reshape(kh * kw, cin_pad, cout)           # tap-major: dy*3 + dx
        return {"w": w.astype(jnp.bfloat16),
                "b": layer["shift"].reshape(1, cout).astype(jnp.float32)}

    def pack_headconv(layer):
        _, _, cin, cout = layer["w"].shape
        w = (layer["w"] * layer["scale"]).reshape(cin, cout)
        w = jnp.pad(w, ((0, 0), (0, F_PAD - cout)))
        b = jnp.pad(layer["shift"], (0, F_PAD - cout)).reshape(1, F_PAD)
        return {"w": w.astype(jnp.bfloat16), "b": b.astype(jnp.float32)}

    # Pack all classifier heads into one lane-dense [128, 128] weight slab.
    w_cols, b_cols = [], []
    for name, _typ, _ncls in ATTRIBUTE_CONFIGS:
        w_cols.append(params["heads"][name]["w"].T)     # [F, ncls]
        b_cols.append(params["heads"][name]["b"])
    w_all = jnp.concatenate(w_cols, axis=1)             # [F, TOTAL_CLASSES]
    w_all = jnp.pad(w_all, ((0, F_PAD - FEATURE_DIM), (0, LANES - TOTAL_CLASSES)))
    b_all = jnp.pad(jnp.concatenate(b_cols),
                    (0, LANES - TOTAL_CLASSES)).reshape(1, LANES)

    return {
        "stem": pack_conv3x3(params["stem"]),
        "blk":  pack_conv3x3(params["blk"]),
        "headconv": pack_headconv(params["headconv"]),
        "heads": {"w": w_all.astype(jnp.bfloat16), "b": b_all.astype(jnp.float32)},
    }


# ----------------------------------------------------------------------------
# Forward
# ----------------------------------------------------------------------------
def forward(packed, x_nchw):
    """x_nchw: [B, 3, H, W] float32 (PyTorch NCHW). Returns dict of outputs."""
    x = jnp.transpose(x_nchw, (0, 2, 3, 1))                       # NCHW -> NHWC
    x = conv3x3_bn_silu(x, packed["stem"], stride=2, pad=1)       # [B, 8, 8, 16]
    x = conv3x3_bn_silu(x, packed["blk"], stride=2, pad=1)        # [B, 4, 4, 32]
    # 1x1 head-conv + GAP + all classifier heads fused into one kernel
    return fused_tail(x, packed["headconv"], packed["heads"])


if __name__ == "__main__":
    key = jax.random.PRNGKey(0)
    pkey, xkey = jax.random.split(key)
    packed = pack_params(init_params(pkey))

    # Small deterministic input, NCHW like the PyTorch module expects.
    x = jax.random.normal(xkey, (2, 3, 16, 16), jnp.float32)

    fwd = jax.jit(forward)
    outputs = jax.block_until_ready(fwd(packed, x))

    # Light sanity checks on shapes / semantics.
    assert outputs["color"].shape == (2, 5)
    assert outputs["damage"].shape == (2, 4)
    assert outputs["quality"].shape == (2, 3)
    assert bool(jnp.allclose(jnp.sum(outputs["color"], axis=1), 1.0, atol=1e-3))
    assert bool(jnp.all((outputs["damage"] >= 0.0) & (outputs["damage"] <= 1.0001)))

    print("KERNEL_OK")
</pallas_src>

<mosaic_0001>
module attributes {stable_mosaic.version = 11 : i64} {
  func.func @_conv3x3_kernel(%arg0: i32, %arg1: memref<1x4x9x9x8xbf16, #tpu.memory_space<vmem>>, %arg2: memref<9x8x16xbf16, #tpu.memory_space<vmem>>, %arg3: memref<1x16xf32, #tpu.memory_space<vmem>>, %arg4: memref<1x64x16xbf16, #tpu.memory_space<vmem>>) attributes {dimension_semantics = [#tpu.dimension_semantics<parallel>], iteration_bounds = array<i64: 2>, scalar_prefetch = 0 : i64, scratch_operands = 0 : i64, tpu.core_type = #tpu.core_type<tc>, window_params = [{transform_indices = @transform_0, window_bounds = array<i64: 1, 4, 9, 9, 8>}, {pipeline_mode = #tpu.pipeline_mode<synchronous>, transform_indices = @transform_1, window_bounds = array<i64: 9, 8, 16>}, {pipeline_mode = #tpu.pipeline_mode<synchronous>, transform_indices = @transform_2, window_bounds = array<i64: 1, 16>}, {transform_indices = @transform_3, window_bounds = array<i64: 1, 64, 16>}]} {
    %c0 = arith.constant 0 : index
    %c0_0 = arith.constant 0 : index
    %c0_1 = arith.constant 0 : index
    %c0_2 = arith.constant 0 : index
    %c0_3 = arith.constant 0 : index
    %0 = vector.load %arg1[%c0, %c0_0, %c0_1, %c0_2, %c0_3] : memref<1x4x9x9x8xbf16, #tpu.memory_space<vmem>>, vector<1x4x9x9x8xbf16>
    %1 = vector.shape_cast %0 : vector<1x4x9x9x8xbf16> to vector<4x9x9x8xbf16>
    %c0_4 = arith.constant 0 : index
    %c0_5 = arith.constant 0 : index
    %c0_6 = arith.constant 0 : index
    %2 = vector.load %arg2[%c0_4, %c0_5, %c0_6] : memref<9x8x16xbf16, #tpu.memory_space<vmem>>, vector<9x8x16xbf16>
    %cst = arith.constant 0.000000e+00 : f32
    %3 = vector.broadcast %cst : f32 to vector<64x16xf32>
    %4 = vector.extract_strided_slice %1 {offsets = [0, 0, 0, 0], sizes = [1, 8, 8, 8], strides = [1, 1, 1, 1]} : vector<4x9x9x8xbf16> to vector<1x8x8x8xbf16>
    %5 = vector.shape_cast %4 : vector<1x8x8x8xbf16> to vector<8x8x8xbf16>
    %6 = vector.shape_cast %5 : vector<8x8x8xbf16> to vector<64x8xbf16>
    %7 = vector.extract_strided_slice %2 {offsets = [0, 0, 0], sizes = [1, 8, 16], strides = [1, 1, 1]} : vector<9x8x16xbf16> to vector<1x8x16xbf16>
    %8 = vector.shape_cast %7 : vector<1x8x16xbf16> to vector<8x16xbf16>
    %cst_7 = arith.constant dense<0.000000e+00> : vector<64x16xf32>
    %9 = tpu.matmul %6, %8, %cst_7 {dimension_numbers = #tpu.dot_dimension_numbers<[1], [0], [0], [1], [0, 0, 1, 1], [], []>} : vector<64x8xbf16>, vector<8x16xbf16>, vector<64x16xf32> -> vector<64x16xf32>
    %10 = arith.addf %3, %9 : vector<64x16xf32>
    %11 = vector.extract_strided_slice %1 {offsets = [1, 0, 0, 0], sizes = [1, 8, 8, 8], strides = [1, 1, 1, 1]} : vector<4x9x9x8xbf16> to vector<1x8x8x8xbf16>
    %12 = vector.shape_cast %11 : vector<1x8x8x8xbf16> to vector<8x8x8xbf16>
    %13 = vector.shape_cast %12 : vector<8x8x8xbf16> to vector<64x8xbf16>
    %14 = vector.extract_strided_slice %2 {offsets = [1, 0, 0], sizes = [1, 8, 16], strides = [1, 1, 1]} : vector<9x8x16xbf16> to vector<1x8x16xbf16>
    %15 = vector.shape_cast %14 : vector<1x8x16xbf16> to vector<8x16xbf16>
    %cst_8 = arith.constant dense<0.000000e+00> : vector<64x16xf32>
    %16 = tpu.matmul %13, %15, %cst_8 {dimension_numbers = #tpu.dot_dimension_numbers<[1], [0], [0], [1], [0, 0, 1, 1], [], []>} : vector<64x8xbf16>, vector<8x16xbf16>, vector<64x16xf32> -> vector<64x16xf32>
    %17 = arith.addf %10, %16 : vector<64x16xf32>
    %18 = vector.extract_strided_slice %1 {offsets = [0, 0, 1, 0], sizes = [1, 8, 8, 8], strides = [1, 1, 1, 1]} : vector<4x9x9x8xbf16> to vector<1x8x8x8xbf16>
    %19 = vector.shape_cast %18 : vector<1x8x8x8xbf16> to vector<8x8x8xbf16>
    %20 = vector.shape_cast %19 : vector<8x8x8xbf16> to vector<64x8xbf16>
    %21 = vector.extract_strided_slice %2 {offsets = [2, 0, 0], sizes = [1, 8, 16], strides = [1, 1, 1]} : vector<9x8x16xbf16> to vector<1x8x16xbf16>
    %22 = vector.shape_cast %21 : vector<1x8x16xbf16> to vector<8x16xbf16>
    %cst_9 = arith.constant dense<0.000000e+00> : vector<64x16xf32>
    %23 = tpu.matmul %20, %22, %cst_9 {dimension_numbers = #tpu.dot_dimension_numbers<[1], [0], [0], [1], [0, 0, 1, 1], [], []>} : vector<64x8xbf16>, vector<8x16xbf16>, vector<64x16xf32> -> vector<64x16xf32>
    %24 = arith.addf %17, %23 : vector<64x16xf32>
    %25 = vector.extract_strided_slice %1 {offsets = [2, 0, 0, 0], sizes = [1, 8, 8, 8], strides = [1, 1, 1, 1]} : vector<4x9x9x8xbf16> to vector<1x8x8x8xbf16>
    %26 = vector.shape_cast %25 : vector<1x8x8x8xbf16> to vector<8x8x8xbf16>
    %27 = vector.shape_cast %26 : vector<8x8x8xbf16> to vector<64x8xbf16>
    %28 = vector.extract_strided_slice %2 {offsets = [3, 0, 0], sizes = [1, 8, 16], strides = [1, 1, 1]} : vector<9x8x16xbf16> to vector<1x8x16xbf16>
    %29 = vector.shape_cast %28 : vector<1x8x16xbf16> to vector<8x16xbf16>
    %cst_10 = arith.constant dense<0.000000e+00> : vector<64x16xf32>
    %30 = tpu.matmul %27, %29, %cst_10 {dimension_numbers = #tpu.dot_dimension_numbers<[1], [0], [0], [1], [0, 0, 1, 1], [], []>} : vector<64x8xbf16>, vector<8x16xbf16>, vector<64x16xf32> -> vector<64x16xf32>
    %31 = arith.addf %24, %30 : vector<64x16xf32>
    %32 = vector.extract_strided_slice %1 {offsets = [3, 0, 0, 0], sizes = [1, 8, 8, 8], strides = [1, 1, 1, 1]} : vector<4x9x9x8xbf16> to vector<1x8x8x8xbf16>
    %33 = vector.shape_cast %32 : vector<1x8x8x8xbf16> to vector<8x8x8xbf16>
    %34 = vector.shape_cast %33 : vector<8x8x8xbf16> to vector<64x8xbf16>
    %35 = vector.extract_strided_slice %2 {offsets = [4, 0, 0], sizes = [1, 8, 16], strides = [1, 1, 1]} : vector<9x8x16xbf16> to vector<1x8x16xbf16>
    %36 = vector.shape_cast %35 : vector<1x8x16xbf16> to vector<8x16xbf16>
    %cst_11 = arith.constant dense<0.000000e+00> : vector<64x16xf32>
    %37 = tpu.matmul %34, %36, %cst_11 {dimension_numbers = #tpu.dot_dimension_numbers<[1], [0], [0], [1], [0, 0, 1, 1], [], []>} : vector<64x8xbf16>, vector<8x16xbf16>, vector<64x16xf32> -> vector<64x16xf32>
    %38 = arith.addf %31, %37 : vector<64x16xf32>
    %39 = vector.extract_strided_slice %1 {offsets = [2, 0, 1, 0], sizes = [1, 8, 8, 8], strides = [1, 1, 1, 1]} : vector<4x9x9x8xbf16> to vector<1x8x8x8xbf16>
    %40 = vector.shape_cast %39 : vector<1x8x8x8xbf16> to vector<8x8x8xbf16>
    %41 = vector.shape_cast %40 : vector<8x8x8xbf16> to vector<64x8xbf16>
    %42 = vector.extract_strided_slice %2 {offsets = [5, 0, 0], sizes = [1, 8, 16], strides = [1, 1, 1]} : vector<9x8x16xbf16> to vector<1x8x16xbf16>
    %43 = vector.shape_cast %42 : vector<1x8x16xbf16> to vector<8x16xbf16>
    %cst_12 = arith.constant dense<0.000000e+00> : vector<64x16xf32>
    %44 = tpu.matmul %41, %43, %cst_12 {dimension_numbers = #tpu.dot_dimension_numbers<[1], [0], [0], [1], [0, 0, 1, 1], [], []>} : vector<64x8xbf16>, vector<8x16xbf16>, vector<64x16xf32> -> vector<64x16xf32>
    %45 = arith.addf %38, %44 : vector<64x16xf32>
    %46 = vector.extract_strided_slice %1 {offsets = [0, 1, 0, 0], sizes = [1, 8, 8, 8], strides = [1, 1, 1, 1]} : vector<4x9x9x8xbf16> to vector<1x8x8x8xbf16>
    %47 = vector.shape_cast %46 : vector<1x8x8x8xbf16> to vector<8x8x8xbf16>
    %48 = vector.shape_cast %47 : vector<8x8x8xbf16> to vector<64x8xbf16>
    %49 = vector.extract_strided_slice %2 {offsets = [6, 0, 0], sizes = [1, 8, 16], strides = [1, 1, 1]} : vector<9x8x16xbf16> to vector<1x8x16xbf16>
    %50 = vector.shape_cast %49 : vector<1x8x16xbf16> to vector<8x16xbf16>
    %cst_13 = arith.constant dense<0.000000e+00> : vector<64x16xf32>
    %51 = tpu.matmul %48, %50, %cst_13 {dimension_numbers = #tpu.dot_dimension_numbers<[1], [0], [0], [1], [0, 0, 1, 1], [], []>} : vector<64x8xbf16>, vector<8x16xbf16>, vector<64x16xf32> -> vector<64x16xf32>
    %52 = arith.addf %45, %51 : vector<64x16xf32>
    %53 = vector.extract_strided_slice %1 {offsets = [1, 1, 0, 0], sizes = [1, 8, 8, 8], strides = [1, 1, 1, 1]} : vector<4x9x9x8xbf16> to vector<1x8x8x8xbf16>
    %54 = vector.shape_cast %53 : vector<1x8x8x8xbf16> to vector<8x8x8xbf16>
    %55 = vector.shape_cast %54 : vector<8x8x8xbf16> to vector<64x8xbf16>
    %56 = vector.extract_strided_slice %2 {offsets = [7, 0, 0], sizes = [1, 8, 16], strides = [1, 1, 1]} : vector<9x8x16xbf16> to vector<1x8x16xbf16>
    %57 = vector.shape_cast %56 : vector<1x8x16xbf16> to vector<8x16xbf16>
    %cst_14 = arith.constant dense<0.000000e+00> : vector<64x16xf32>
    %58 = tpu.matmul %55, %57, %cst_14 {dimension_numbers = #tpu.dot_dimension_numbers<[1], [0], [0], [1], [0, 0, 1, 1], [], []>} : vector<64x8xbf16>, vector<8x16xbf16>, vector<64x16xf32> -> vector<64x16xf32>
    %59 = arith.addf %52, %58 : vector<64x16xf32>
    %60 = vector.extract_strided_slice %1 {offsets = [0, 1, 1, 0], sizes = [1, 8, 8, 8], strides = [1, 1, 1, 1]} : vector<4x9x9x8xbf16> to vector<1x8x8x8xbf16>
    %61 = vector.shape_cast %60 : vector<1x8x8x8xbf16> to vector<8x8x8xbf16>
    %62 = vector.shape_cast %61 : vector<8x8x8xbf16> to vector<64x8xbf16>
    %63 = vector.extract_strided_slice %2 {offsets = [8, 0, 0], sizes = [1, 8, 16], strides = [1, 1, 1]} : vector<9x8x16xbf16> to vector<1x8x16xbf16>
    %64 = vector.shape_cast %63 : vector<1x8x16xbf16> to vector<8x16xbf16>
    %cst_15 = arith.constant dense<0.000000e+00> : vector<64x16xf32>
    %65 = tpu.matmul %62, %64, %cst_15 {dimension_numbers = #tpu.dot_dimension_numbers<[1], [0], [0], [1], [0, 0, 1, 1], [], []>} : vector<64x8xbf16>, vector<8x16xbf16>, vector<64x16xf32> -> vector<64x16xf32>
    %66 = arith.addf %59, %65 : vector<64x16xf32>
    %c0_16 = arith.constant 0 : index
    %c0_17 = arith.constant 0 : index
    %67 = vector.load %arg3[%c0_16, %c0_17] : memref<1x16xf32, #tpu.memory_space<vmem>>, vector<1x16xf32>
    %68 = vector.broadcast %67 : vector<1x16xf32> to vector<64x16xf32>
    %69 = arith.addf %66, %68 : vector<64x16xf32>
    %70 = math.absf %69 : vector<64x16xf32>
    %cst_18 = arith.constant 0.000000e+00 : f32
    %71 = vector.broadcast %cst_18 : f32 to vector<64x16xf32>
    %72 = arith.subf %71, %70 : vector<64x16xf32>
    %73 = math.exp %72 : vector<64x16xf32>
    %cst_19 = arith.constant 1.000000e+00 : f32
    %74 = vector.broadcast %cst_19 : f32 to vector<64x16xf32>
    %75 = arith.addf %74, %73 : vector<64x16xf32>
    %76 = tpu.reciprocal %75 {approx = true} : vector<64x16xf32> -> vector<64x16xf32>
    %cst_20 = arith.constant 0.000000e+00 : f32
    %77 = vector.broadcast %cst_20 : f32 to vector<64x16xf32>
    %78 = arith.cmpf oge, %69, %77 : vector<64x16xf32>
    %79 = arith.mulf %73, %76 : vector<64x16xf32>
    %80 = arith.select %78, %76, %79 : vector<64x16xi1>, vector<64x16xf32>
    %81 = arith.mulf %69, %80 : vector<64x16xf32>
    %82 = arith.truncf %81 : vector<64x16xf32> to vector<64x16xbf16>
    %c0_21 = arith.constant 0 : index
    %c0_22 = arith.constant 0 : index
    %c0_23 = arith.constant 0 : index
    %83 = vector.load %arg4[%c0_21, %c0_22, %c0_23] : memref<1x64x16xbf16, #tpu.memory_space<vmem>>, vector<1x64x16xbf16>
    %84 = vector.shape_cast %83 : vector<1x64x16xbf16> to vector<64x16xbf16>
    %85 = vector.shape_cast %82 : vector<64x16xbf16> to vector<1x64x16xbf16>
    tpu.vector_store %arg4[%c0_21, %c0_22, %c0_23], %85 {strides = array<i32>} : memref<1x64x16xbf16, #tpu.memory_space<vmem>>, vector<1x64x16xbf16>,
    return
  }
  func.func @transform_0(%arg0: i32) -> (i32, i32, i32, i32, i32) {
    %c0_i32 = arith.constant 0 : i32
    %c0_i32_0 = arith.constant 0 : i32
    %c0_i32_1 = arith.constant 0 : i32
    %c0_i32_2 = arith.constant 0 : i32
    %c0_i32_3 = arith.constant 0 : i32
    return %arg0, %c0_i32, %c0_i32_0, %c0_i32_1, %c0_i32_2 : i32, i32, i32, i32, i32
  }
  func.func @transform_1(%arg0: i32) -> (i32, i32, i32) {
    %c0_i32 = arith.constant 0 : i32
    %c0_i32_0 = arith.constant 0 : i32
    %c0_i32_1 = arith.constant 0 : i32
    %c0_i32_2 = arith.constant 0 : i32
    return %c0_i32, %c0_i32_0, %c0_i32_1 : i32, i32, i32
  }
  func.func @transform_2(%arg0: i32) -> (i32, i32) {
    %c0_i32 = arith.constant 0 : i32
    %c0_i32_0 = arith.constant 0 : i32
    %c0_i32_1 = arith.constant 0 : i32
    return %c0_i32, %c0_i32_0 : i32, i32
  }
  func.func @transform_3(%arg0: i32) -> (i32, i32, i32) {
    %c0_i32 = arith.constant 0 : i32
    %c0_i32_0 = arith.constant 0 : i32
    %c0_i32_1 = arith.constant 0 : i32
    return %arg0, %c0_i32, %c0_i32_0 : i32, i32, i32
  }
}

module attributes {stable_mosaic.version = 11 : i64} {
  func.func @_conv3x3_kernel(%arg0: i32, %arg1: memref<1x4x5x5x16xbf16, #tpu.memory_space<vmem>>, %arg2: memref<9x16x32xbf16, #tpu.memory_space<vmem>>, %arg3: memref<1x32xf32, #tpu.memory_space<vmem>>, %arg4: memref<1x16x32xbf16, #tpu.memory_space<vmem>>) attributes {dimension_semantics = [#tpu.dimension_semantics<parallel>], iteration_bounds = array<i64: 2>, scalar_prefetch = 0 : i64, scratch_operands = 0 : i64, tpu.core_type = #tpu.core_type<tc>, window_params = [{transform_indices = @transform_0, window_bounds = array<i64: 1, 4, 5, 5, 16>}, {pipeline_mode = #tpu.pipeline_mode<synchronous>, transform_indices = @transform_1, window_bounds = array<i64: 9, 16, 32>}, {pipeline_mode = #tpu.pipeline_mode<synchronous>, transform_indices = @transform_2, window_bounds = array<i64: 1, 32>}, {transform_indices = @transform_3, window_bounds = array<i64: 1, 16, 32>}]} {
    %c0 = arith.constant 0 : index
    %c0_0 = arith.constant 0 : index
    %c0_1 = arith.constant 0 : index
    %c0_2 = arith.constant 0 : index
    %c0_3 = arith.constant 0 : index
    %0 = vector.load %arg1[%c0, %c0_0, %c0_1, %c0_2, %c0_3] : memref<1x4x5x5x16xbf16, #tpu.memory_space<vmem>>, vector<1x4x5x5x16xbf16>
    %1 = vector.shape_cast %0 : vector<1x4x5x5x16xbf16> to vector<4x5x5x16xbf16>
    %c0_4 = arith.constant 0 : index
    %c0_5 = arith.constant 0 : index
    %c0_6 = arith.constant 0 : index
    %2 = vector.load %arg2[%c0_4, %c0_5, %c0_6] : memref<9x16x32xbf16, #tpu.memory_space<vmem>>, vector<9x16x32xbf16>
    %cst = arith.constant 0.000000e+00 : f32
    %3 = vector.broadcast %cst : f32 to vector<16x32xf32>
    %4 = vector.extract_strided_slice %1 {offsets = [0, 0, 0, 0], sizes = [1, 4, 4, 16], strides = [1, 1, 1, 1]} : vector<4x5x5x16xbf16> to vector<1x4x4x16xbf16>
    %5 = vector.shape_cast %4 : vector<1x4x4x16xbf16> to vector<4x4x16xbf16>
    %6 = vector.shape_cast %5 : vector<4x4x16xbf16> to vector<16x16xbf16>
    %7 = vector.extract_strided_slice %2 {offsets = [0, 0, 0], sizes = [1, 16, 32], strides = [1, 1, 1]} : vector<9x16x32xbf16> to vector<1x16x32xbf16>
    %8 = vector.shape_cast %7 : vector<1x16x32xbf16> to vector<16x32xbf16>
    %cst_7 = arith.constant dense<0.000000e+00> : vector<16x32xf32>
    %9 = tpu.matmul %6, %8, %cst_7 {dimension_numbers = #tpu.dot_dimension_numbers<[1], [0], [0], [1], [0, 0, 1, 1], [], []>} : vector<16x16xbf16>, vector<16x32xbf16>, vector<16x32xf32> -> vector<16x32xf32>
    %10 = arith.addf %3, %9 : vector<16x32xf32>
    %11 = vector.extract_strided_slice %1 {offsets = [1, 0, 0, 0], sizes = [1, 4, 4, 16], strides = [1, 1, 1, 1]} : vector<4x5x5x16xbf16> to vector<1x4x4x16xbf16>
    %12 = vector.shape_cast %11 : vector<1x4x4x16xbf16> to vector<4x4x16xbf16>
    %13 = vector.shape_cast %12 : vector<4x4x16xbf16> to vector<16x16xbf16>
    %14 = vector.extract_strided_slice %2 {offsets = [1, 0, 0], sizes = [1, 16, 32], strides = [1, 1, 1]} : vector<9x16x32xbf16> to vector<1x16x32xbf16>
    %15 = vector.shape_cast %14 : vector<1x16x32xbf16> to vector<16x32xbf16>
    %cst_8 = arith.constant dense<0.000000e+00> : vector<16x32xf32>
    %16 = tpu.matmul %13, %15, %cst_8 {dimension_numbers = #tpu.dot_dimension_numbers<[1], [0], [0], [1], [0, 0, 1, 1], [], []>} : vector<16x16xbf16>, vector<16x32xbf16>, vector<16x32xf32> -> vector<16x32xf32>
    %17 = arith.addf %10, %16 : vector<16x32xf32>
    %18 = vector.extract_strided_slice %1 {offsets = [0, 0, 1, 0], sizes = [1, 4, 4, 16], strides = [1, 1, 1, 1]} : vector<4x5x5x16xbf16> to vector<1x4x4x16xbf16>
    %19 = vector.shape_cast %18 : vector<1x4x4x16xbf16> to vector<4x4x16xbf16>
    %20 = vector.shape_cast %19 : vector<4x4x16xbf16> to vector<16x16xbf16>
    %21 = vector.extract_strided_slice %2 {offsets = [2, 0, 0], sizes = [1, 16, 32], strides = [1, 1, 1]} : vector<9x16x32xbf16> to vector<1x16x32xbf16>
    %22 = vector.shape_cast %21 : vector<1x16x32xbf16> to vector<16x32xbf16>
    %cst_9 = arith.constant dense<0.000000e+00> : vector<16x32xf32>
    %23 = tpu.matmul %20, %22, %cst_9 {dimension_numbers = #tpu.dot_dimension_numbers<[1], [0], [0], [1], [0, 0, 1, 1], [], []>} : vector<16x16xbf16>, vector<16x32xbf16>, vector<16x32xf32> -> vector<16x32xf32>
    %24 = arith.addf %17, %23 : vector<16x32xf32>
    %25 = vector.extract_strided_slice %1 {offsets = [2, 0, 0, 0], sizes = [1, 4, 4, 16], strides = [1, 1, 1, 1]} : vector<4x5x5x16xbf16> to vector<1x4x4x16xbf16>
    %26 = vector.shape_cast %25 : vector<1x4x4x16xbf16> to vector<4x4x16xbf16>
    %27 = vector.shape_cast %26 : vector<4x4x16xbf16> to vector<16x16xbf16>
    %28 = vector.extract_strided_slice %2 {offsets = [3, 0, 0], sizes = [1, 16, 32], strides = [1, 1, 1]} : vector<9x16x32xbf16> to vector<1x16x32xbf16>
    %29 = vector.shape_cast %28 : vector<1x16x32xbf16> to vector<16x32xbf16>
    %cst_10 = arith.constant dense<0.000000e+00> : vector<16x32xf32>
    %30 = tpu.matmul %27, %29, %cst_10 {dimension_numbers = #tpu.dot_dimension_numbers<[1], [0], [0], [1], [0, 0, 1, 1], [], []>} : vector<16x16xbf16>, vector<16x32xbf16>, vector<16x32xf32> -> vector<16x32xf32>
    %31 = arith.addf %24, %30 : vector<16x32xf32>
    %32 = vector.extract_strided_slice %1 {offsets = [3, 0, 0, 0], sizes = [1, 4, 4, 16], strides = [1, 1, 1, 1]} : vector<4x5x5x16xbf16> to vector<1x4x4x16xbf16>
    %33 = vector.shape_cast %32 : vector<1x4x4x16xbf16> to vector<4x4x16xbf16>
    %34 = vector.shape_cast %33 : vector<4x4x16xbf16> to vector<16x16xbf16>
    %35 = vector.extract_strided_slice %2 {offsets = [4, 0, 0], sizes = [1, 16, 32], strides = [1, 1, 1]} : vector<9x16x32xbf16> to vector<1x16x32xbf16>
    %36 = vector.shape_cast %35 : vector<1x16x32xbf16> to vector<16x32xbf16>
    %cst_11 = arith.constant dense<0.000000e+00> : vector<16x32xf32>
    %37 = tpu.matmul %34, %36, %cst_11 {dimension_numbers = #tpu.dot_dimension_numbers<[1], [0], [0], [1], [0, 0, 1, 1], [], []>} : vector<16x16xbf16>, vector<16x32xbf16>, vector<16x32xf32> -> vector<16x32xf32>
    %38 = arith.addf %31, %37 : vector<16x32xf32>
    %39 = vector.extract_strided_slice %1 {offsets = [2, 0, 1, 0], sizes = [1, 4, 4, 16], strides = [1, 1, 1, 1]} : vector<4x5x5x16xbf16> to vector<1x4x4x16xbf16>
    %40 = vector.shape_cast %39 : vector<1x4x4x16xbf16> to vector<4x4x16xbf16>
    %41 = vector.shape_cast %40 : vector<4x4x16xbf16> to vector<16x16xbf16>
    %42 = vector.extract_strided_slice %2 {offsets = [5, 0, 0], sizes = [1, 16, 32], strides = [1, 1, 1]} : vector<9x16x32xbf16> to vector<1x16x32xbf16>
    %43 = vector.shape_cast %42 : vector<1x16x32xbf16> to vector<16x32xbf16>
    %cst_12 = arith.constant dense<0.000000e+00> : vector<16x32xf32>
    %44 = tpu.matmul %41, %43, %cst_12 {dimension_numbers = #tpu.dot_dimension_numbers<[1], [0], [0], [1], [0, 0, 1, 1], [], []>} : vector<16x16xbf16>, vector<16x32xbf16>, vector<16x32xf32> -> vector<16x32xf32>
    %45 = arith.addf %38, %44 : vector<16x32xf32>
    %46 = vector.extract_strided_slice %1 {offsets = [0, 1, 0, 0], sizes = [1, 4, 4, 16], strides = [1, 1, 1, 1]} : vector<4x5x5x16xbf16> to vector<1x4x4x16xbf16>
    %47 = vector.shape_cast %46 : vector<1x4x4x16xbf16> to vector<4x4x16xbf16>
    %48 = vector.shape_cast %47 : vector<4x4x16xbf16> to vector<16x16xbf16>
    %49 = vector.extract_strided_slice %2 {offsets = [6, 0, 0], sizes = [1, 16, 32], strides = [1, 1, 1]} : vector<9x16x32xbf16> to vector<1x16x32xbf16>
    %50 = vector.shape_cast %49 : vector<1x16x32xbf16> to vector<16x32xbf16>
    %cst_13 = arith.constant dense<0.000000e+00> : vector<16x32xf32>
    %51 = tpu.matmul %48, %50, %cst_13 {dimension_numbers = #tpu.dot_dimension_numbers<[1], [0], [0], [1], [0, 0, 1, 1], [], []>} : vector<16x16xbf16>, vector<16x32xbf16>, vector<16x32xf32> -> vector<16x32xf32>
    %52 = arith.addf %45, %51 : vector<16x32xf32>
    %53 = vector.extract_strided_slice %1 {offsets = [1, 1, 0, 0], sizes = [1, 4, 4, 16], strides = [1, 1, 1, 1]} : vector<4x5x5x16xbf16> to vector<1x4x4x16xbf16>
    %54 = vector.shape_cast %53 : vector<1x4x4x16xbf16> to vector<4x4x16xbf16>
    %55 = vector.shape_cast %54 : vector<4x4x16xbf16> to vector<16x16xbf16>
    %56 = vector.extract_strided_slice %2 {offsets = [7, 0, 0], sizes = [1, 16, 32], strides = [1, 1, 1]} : vector<9x16x32xbf16> to vector<1x16x32xbf16>
    %57 = vector.shape_cast %56 : vector<1x16x32xbf16> to vector<16x32xbf16>
    %cst_14 = arith.constant dense<0.000000e+00> : vector<16x32xf32>
    %58 = tpu.matmul %55, %57, %cst_14 {dimension_numbers = #tpu.dot_dimension_numbers<[1], [0], [0], [1], [0, 0, 1, 1], [], []>} : vector<16x16xbf16>, vector<16x32xbf16>, vector<16x32xf32> -> vector<16x32xf32>
    %59 = arith.addf %52, %58 : vector<16x32xf32>
    %60 = vector.extract_strided_slice %1 {offsets = [0, 1, 1, 0], sizes = [1, 4, 4, 16], strides = [1, 1, 1, 1]} : vector<4x5x5x16xbf16> to vector<1x4x4x16xbf16>
    %61 = vector.shape_cast %60 : vector<1x4x4x16xbf16> to vector<4x4x16xbf16>
    %62 = vector.shape_cast %61 : vector<4x4x16xbf16> to vector<16x16xbf16>
    %63 = vector.extract_strided_slice %2 {offsets = [8, 0, 0], sizes = [1, 16, 32], strides = [1, 1, 1]} : vector<9x16x32xbf16> to vector<1x16x32xbf16>
    %64 = vector.shape_cast %63 : vector<1x16x32xbf16> to vector<16x32xbf16>
    %cst_15 = arith.constant dense<0.000000e+00> : vector<16x32xf32>
    %65 = tpu.matmul %62, %64, %cst_15 {dimension_numbers = #tpu.dot_dimension_numbers<[1], [0], [0], [1], [0, 0, 1, 1], [], []>} : vector<16x16xbf16>, vector<16x32xbf16>, vector<16x32xf32> -> vector<16x32xf32>
    %66 = arith.addf %59, %65 : vector<16x32xf32>
    %c0_16 = arith.constant 0 : index
    %c0_17 = arith.constant 0 : index
    %67 = vector.load %arg3[%c0_16, %c0_17] : memref<1x32xf32, #tpu.memory_space<vmem>>, vector<1x32xf32>
    %68 = vector.broadcast %67 : vector<1x32xf32> to vector<16x32xf32>
    %69 = arith.addf %66, %68 : vector<16x32xf32>
    %70 = math.absf %69 : vector<16x32xf32>
    %cst_18 = arith.constant 0.000000e+00 : f32
    %71 = vector.broadcast %cst_18 : f32 to vector<16x32xf32>
    %72 = arith.subf %71, %70 : vector<16x32xf32>
    %73 = math.exp %72 : vector<16x32xf32>
    %cst_19 = arith.constant 1.000000e+00 : f32
    %74 = vector.broadcast %cst_19 : f32 to vector<16x32xf32>
    %75 = arith.addf %74, %73 : vector<16x32xf32>
    %76 = tpu.reciprocal %75 {approx = true} : vector<16x32xf32> -> vector<16x32xf32>
    %cst_20 = arith.constant 0.000000e+00 : f32
    %77 = vector.broadcast %cst_20 : f32 to vector<16x32xf32>
    %78 = arith.cmpf oge, %69, %77 : vector<16x32xf32>
    %79 = arith.mulf %73, %76 : vector<16x32xf32>
    %80 = arith.select %78, %76, %79 : vector<16x32xi1>, vector<16x32xf32>
    %81 = arith.mulf %69, %80 : vector<16x32xf32>
    %82 = arith.truncf %81 : vector<16x32xf32> to vector<16x32xbf16>
    %c0_21 = arith.constant 0 : index
    %c0_22 = arith.constant 0 : index
    %c0_23 = arith.constant 0 : index
    %83 = vector.load %arg4[%c0_21, %c0_22, %c0_23] : memref<1x16x32xbf16, #tpu.memory_space<vmem>>, vector<1x16x32xbf16>
    %84 = vector.shape_cast %83 : vector<1x16x32xbf16> to vector<16x32xbf16>
    %85 = vector.shape_cast %82 : vector<16x32xbf16> to vector<1x16x32xbf16>
    tpu.vector_store %arg4[%c0_21, %c0_22, %c0_23], %85 {strides = array<i32>} : memref<1x16x32xbf16, #tpu.memory_space<vmem>>, vector<1x16x32xbf16>,
    return
  }
  func.func @transform_0(%arg0: i32) -> (i32, i32, i32, i32, i32) {
    %c0_i32 = arith.constant 0 : i32
    %c0_i32_0 = arith.constant 0 : i32
    %c0_i32_1 = arith.constant 0 : i32
    %c0_i32_2 = arith.constant 0 : i32
    %c0_i32_3 = arith.constant 0 : i32
    return %arg0, %c0_i32, %c0_i32_0, %c0_i32_1, %c0_i32_2 : i32, i32, i32, i32, i32
  }
  func.func @transform_1(%arg0: i32) -> (i32, i32, i32) {
    %c0_i32 = arith.constant 0 : i32
    %c0_i32_0 = arith.constant 0 : i32
    %c0_i32_1 = arith.constant 0 : i32
    %c0_i32_2 = arith.constant 0 : i32
    return %c0_i32, %c0_i32_0, %c0_i32_1 : i32, i32, i32
  }
  func.func @transform_2(%arg0: i32) -> (i32, i32) {
    %c0_i32 = arith.constant 0 : i32
    %c0_i32_0 = arith.constant 0 : i32
    %c0_i32_1 = arith.constant 0 : i32
    return %c0_i32, %c0_i32_0 : i32, i32
  }
  func.func @transform_3(%arg0: i32) -> (i32, i32, i32) {
    %c0_i32 = arith.constant 0 : i32
    %c0_i32_0 = arith.constant 0 : i32
    %c0_i32_1 = arith.constant 0 : i32
    return %arg0, %c0_i32, %c0_i32_0 : i32, i32, i32
  }
}

module attributes {stable_mosaic.version = 11 : i64} {
  func.func @_tail_kernel(%arg0: i32, %arg1: memref<128x32xbf16, #tpu.memory_space<vmem>>, %arg2: memref<32x128xbf16, #tpu.memory_space<vmem>>, %arg3: memref<1x128xf32, #tpu.memory_space<vmem>>, %arg4: memref<128x128xbf16, #tpu.memory_space<vmem>>, %arg5: memref<1x128xf32, #tpu.memory_space<vmem>>, %arg6: memref<8x128xf32, #tpu.memory_space<vmem>>) attributes {dimension_semantics = [#tpu.dimension_semantics<parallel>], iteration_bounds = array<i64: 2>, scalar_prefetch = 0 : i64, scratch_operands = 0 : i64, tpu.core_type = #tpu.core_type<tc>, window_params = [{transform_indices = @transform_0, window_bounds = array<i64: 128, 32>}, {pipeline_mode = #tpu.pipeline_mode<synchronous>, transform_indices = @transform_1, window_bounds = array<i64: 32, 128>}, {pipeline_mode = #tpu.pipeline_mode<synchronous>, transform_indices = @transform_2, window_bounds = array<i64: 1, 128>}, {pipeline_mode = #tpu.pipeline_mode<synchronous>, transform_indices = @transform_3, window_bounds = array<i64: 128, 128>}, {pipeline_mode = #tpu.pipeline_mode<synchronous>, transform_indices = @transform_4, window_bounds = array<i64: 1, 128>}, {transform_indices = @transform_5, window_bounds = array<i64: 8, 128>}]} {
    %c0 = arith.constant 0 : index
    %c0_0 = arith.constant 0 : index
    %0 = vector.load %arg1[%c0, %c0_0] : memref<128x32xbf16, #tpu.memory_space<vmem>>, vector<128x32xbf16>
    %c0_1 = arith.constant 0 : index
    %c0_2 = arith.constant 0 : index
    %1 = vector.load %arg2[%c0_1, %c0_2] : memref<32x128xbf16, #tpu.memory_space<vmem>>, vector<32x128xbf16>
    %cst = arith.constant dense<0.000000e+00> : vector<128x128xf32>
    %2 = tpu.matmul %0, %1, %cst {dimension_numbers = #tpu.dot_dimension_numbers<[1], [0], [0], [1], [0, 0, 1, 1], [], []>} : vector<128x32xbf16>, vector<32x128xbf16>, vector<128x128xf32> -> vector<128x128xf32>
    %c0_3 = arith.constant 0 : index
    %c0_4 = arith.constant 0 : index
    %3 = vector.load %arg3[%c0_3, %c0_4] : memref<1x128xf32, #tpu.memory_space<vmem>>, vector<1x128xf32>
    %4 = vector.broadcast %3 : vector<1x128xf32> to vector<128x128xf32>
    %5 = arith.addf %2, %4 : vector<128x128xf32>
    %6 = math.absf %5 : vector<128x128xf32>
    %cst_5 = arith.constant 0.000000e+00 : f32
    %7 = vector.broadcast %cst_5 : f32 to vector<128x128xf32>
    %8 = arith.subf %7, %6 : vector<128x128xf32>
    %9 = math.exp %8 : vector<128x128xf32>
    %cst_6 = arith.constant 1.000000e+00 : f32
    %10 = vector.broadcast %cst_6 : f32 to vector<128x128xf32>
    %11 = arith.addf %10, %9 : vector<128x128xf32>
    %12 = tpu.reciprocal %11 {approx = true} : vector<128x128xf32> -> vector<128x128xf32>
    %cst_7 = arith.constant 0.000000e+00 : f32
    %13 = vector.broadcast %cst_7 : f32 to vector<128x128xf32>
    %14 = arith.cmpf oge, %5, %13 : vector<128x128xf32>
    %15 = arith.mulf %9, %12 : vector<128x128xf32>
    %16 = arith.select %14, %12, %15 : vector<128x128xi1>, vector<128x128xf32>
    %17 = arith.mulf %5, %16 : vector<128x128xf32>
    %18 = vector.shape_cast %17 : vector<128x128xf32> to vector<8x16x128xf32>
    %cst_8 = arith.constant dense<0.000000e+00> : vector<8x128xf32>
    %19 = vector.multi_reduction <add>, %18, %cst_8 [1] : vector<8x16x128xf32> to vector<8x128xf32>
    %cst_9 = arith.constant 6.250000e-02 : f32
    %20 = vector.broadcast %cst_9 : f32 to vector<8x128xf32>
    %21 = arith.mulf %19, %20 : vector<8x128xf32>
    %22 = arith.truncf %21 : vector<8x128xf32> to vector<8x128xbf16>
    %c0_10 = arith.constant 0 : index
    %c0_11 = arith.constant 0 : index
    %23 = vector.load %arg4[%c0_10, %c0_11] : memref<128x128xbf16, #tpu.memory_space<vmem>>, vector<128x128xbf16>
    %cst_12 = arith.constant dense<0.000000e+00> : vector<8x128xf32>
    %24 = tpu.matmul %22, %23, %cst_12 {dimension_numbers = #tpu.dot_dimension_numbers<[1], [0], [0], [1], [0, 0, 1, 1], [], []>} : vector<8x128xbf16>, vector<128x128xbf16>, vector<8x128xf32> -> vector<8x128xf32>
    %c0_13 = arith.constant 0 : index
    %c0_14 = arith.constant 0 : index
    %25 = vector.load %arg5[%c0_13, %c0_14] : memref<1x128xf32, #tpu.memory_space<vmem>>, vector<1x128xf32>
    %26 = vector.broadcast %25 : vector<1x128xf32> to vector<8x128xf32>
    %27 = arith.addf %24, %26 : vector<8x128xf32>
    %28 = math.absf %27 : vector<8x128xf32>
    %cst_15 = arith.constant 0.000000e+00 : f32
    %29 = vector.broadcast %cst_15 : f32 to vector<8x128xf32>
    %30 = arith.subf %29, %28 : vector<8x128xf32>
    %31 = math.exp %30 : vector<8x128xf32>
    %cst_16 = arith.constant 1.000000e+00 : f32
    %32 = vector.broadcast %cst_16 : f32 to vector<8x128xf32>
    %33 = arith.addf %32, %31 : vector<8x128xf32>
    %34 = tpu.reciprocal %33 {approx = true} : vector<8x128xf32> -> vector<8x128xf32>
    %cst_17 = arith.constant 0.000000e+00 : f32
    %35 = vector.broadcast %cst_17 : f32 to vector<8x128xf32>
    %36 = arith.cmpf oge, %27, %35 : vector<8x128xf32>
    %37 = arith.mulf %31, %34 : vector<8x128xf32>
    %38 = arith.select %36, %34, %37 : vector<8x128xi1>, vector<8x128xf32>
    %39 = arith.mulf %27, %38 : vector<8x128xf32>
    %40 = tpu.iota {dimensions = array<i32: 1>} : vector<8x128xi32>
    %cst_18 = arith.constant 0.000000e+00 : f32
    %41 = vector.broadcast %cst_18 : f32 to vector<8x128xf32>
    %c0_i32 = arith.constant 0 : i32
    %42 = vector.broadcast %c0_i32 : i32 to vector<8x128xi32>
    %43 = arith.cmpi sge, %40, %42 : vector<8x128xi32>
    %c5_i32 = arith.constant 5 : i32
    %44 = vector.broadcast %c5_i32 : i32 to vector<8x128xi32>
    %45 = arith.cmpi slt, %40, %44 : vector<8x128xi32>
    %46 = arith.andi %43, %45 : vector<8x128xi1>
    %cst_19 = arith.constant 0xFF800000 : f32
    %47 = vector.broadcast %cst_19 : f32 to vector<8x128xf32>
    %48 = arith.select %46, %39, %47 : vector<8x128xi1>, vector<8x128xf32>
    %cst_20 = arith.constant dense<0xFF800000> : vector<8xf32>
    %49 = vector.multi_reduction <maximumf>, %48, %cst_20 [1] : vector<8x128xf32> to vector<8xf32>
    %50 = vector.shape_cast %49 : vector<8xf32> to vector<8x1xf32>
    %51 = vector.broadcast %50 : vector<8x1xf32> to vector<8x128xf32>
    %52 = arith.subf %48, %51 : vector<8x128xf32>
    %53 = math.exp %52 : vector<8x128xf32>
    %cst_21 = arith.constant dense<0.000000e+00> : vector<8xf32>
    %54 = vector.multi_reduction <add>, %53, %cst_21 [1] : vector<8x128xf32> to vector<8xf32>
    %55 = vector.shape_cast %54 : vector<8xf32> to vector<8x1xf32>
    %56 = vector.broadcast %55 : vector<8x1xf32> to vector<8x128xf32>
    %57 = arith.divf %53, %56 : vector<8x128xf32>
    %58 = arith.select %46, %57, %41 : vector<8x128xi1>, vector<8x128xf32>
    %c5_i32_22 = arith.constant 5 : i32
    %59 = vector.broadcast %c5_i32_22 : i32 to vector<8x128xi32>
    %60 = arith.cmpi sge, %40, %59 : vector<8x128xi32>
    %c9_i32 = arith.constant 9 : i32
    %61 = vector.broadcast %c9_i32 : i32 to vector<8x128xi32>
    %62 = arith.cmpi slt, %40, %61 : vector<8x128xi32>
    %63 = arith.andi %60, %62 : vector<8x128xi1>
    %64 = math.absf %39 : vector<8x128xf32>
    %cst_23 = arith.constant 0.000000e+00 : f32
    %65 = vector.broadcast %cst_23 : f32 to vector<8x128xf32>
    %66 = arith.subf %65, %64 : vector<8x128xf32>
    %67 = math.exp %66 : vector<8x128xf32>
    %cst_24 = arith.constant 1.000000e+00 : f32
    %68 = vector.broadcast %cst_24 : f32 to vector<8x128xf32>
    %69 = arith.addf %68, %67 : vector<8x128xf32>
    %cst_25 = arith.constant 1.000000e+00 : f32
    %70 = vector.broadcast %cst_25 : f32 to vector<8x128xf32>
    %71 = arith.divf %70, %69 : vector<8x128xf32>
    %cst_26 = arith.constant 0.000000e+00 : f32
    %72 = vector.broadcast %cst_26 : f32 to vector<8x128xf32>
    %73 = arith.cmpf oge, %39, %72 : vector<8x128xf32>
    %74 = arith.mulf %67, %71 : vector<8x128xf32>
    %75 = arith.select %73, %71, %74 : vector<8x128xi1>, vector<8x128xf32>
    %76 = arith.select %63, %75, %58 : vector<8x128xi1>, vector<8x128xf32>
    %c9_i32_27 = arith.constant 9 : i32
    %77 = vector.broadcast %c9_i32_27 : i32 to vector<8x128xi32>
    %78 = arith.cmpi sge, %40, %77 : vector<8x128xi32>
    %c12_i32 = arith.constant 12 : i32
    %79 = vector.broadcast %c12_i32 : i32 to vector<8x128xi32>
    %80 = arith.cmpi slt, %40, %79 : vector<8x128xi32>
    %81 = arith.andi %78, %80 : vector<8x128xi1>
    %82 = arith.select %81, %39, %76 : vector<8x128xi1>, vector<8x128xf32>
    %c0_28 = arith.constant 0 : index
    %c0_29 = arith.constant 0 : index
    %83 = vector.load %arg6[%c0_28, %c0_29] : memref<8x128xf32, #tpu.memory_space<vmem>>, vector<8x128xf32>
    tpu.vector_store %arg6[%c0_28, %c0_29], %82 {strides = array<i32>} : memref<8x128xf32, #tpu.memory_space<vmem>>, vector<8x128xf32>,
    return
  }
  func.func @transform_0(%arg0: i32) -> (i32, i32) {
    %c0_i32 = arith.constant 0 : i32
    %c0_i32_0 = arith.constant 0 : i32
    return %arg0, %c0_i32 : i32, i32
  }
  func.func @transform_1(%arg0: i32) -> (i32, i32) {
    %c0_i32 = arith.constant 0 : i32
    %c0_i32_0 = arith.constant 0 : i32
    %c0_i32_1 = arith.constant 0 : i32
    return %c0_i32, %c0_i32_0 : i32, i32
  }
  func.func @transform_2(%arg0: i32) -> (i32, i32) {
    %c0_i32 = arith.constant 0 : i32
    %c0_i32_0 = arith.constant 0 : i32
    %c0_i32_1 = arith.constant 0 : i32
    return %c0_i32, %c0_i32_0 : i32, i32
  }
  func.func @transform_3(%arg0: i32) -> (i32, i32) {
    %c0_i32 = arith.constant 0 : i32
    %c0_i32_0 = arith.constant 0 : i32
    %c0_i32_1 = arith.constant 0 : i32
    return %c0_i32, %c0_i32_0 : i32, i32
  }
  func.func @transform_4(%arg0: i32) -> (i32, i32) {
    %c0_i32 = arith.constant 0 : i32
    %c0_i32_0 = arith.constant 0 : i32
    %c0_i32_1 = arith.constant 0 : i32
    return %c0_i32, %c0_i32_0 : i32, i32
  }
  func.func @transform_5(%arg0: i32) -> (i32, i32) {
    %c0_i32 = arith.constant 0 : i32
    %c0_i32_0 = arith.constant 0 : i32
    return %arg0, %c0_i32 : i32, i32
  }
}

</mosaic_0001>

<bundles_post_ra>
// kernel: forward.4
= control target key start
LH: loop header
LB: loop body
LE: loop exit
PB: predicated region body
PF: predicated region fallthrough
CT: control target
= control target key end

     0   :  { %s906_s12 = smov 0   ;;  %s1080_s0 = inlined_call_operand.vmem [shape: bf16[2,4,5,5,16], index: 0, kind: input, shape index: {}]   ;;  %s1081_s1 = inlined_call_operand.vmem [shape: bf16[9,16,32], index: 1, kind: input, shape index: {}]   ;;  %s1082_s2 = inlined_call_operand.vmem [shape: f32[1,32], index: 2, kind: input, shape index: {}]   ;;  %s1083_s3 = inlined_call_operand.vmem [shape: bf16[2,16,32], index: 3, kind: output, shape index: {}]  }
   0x1 LB: > { %s795_s13 = sadd.s32 4294967295, %s884_s12   ;;  %p799_p0 = scmp.ge.s32.totalorder %s884_s12, 1  ;;  %s884_s12 = sphi %s906_s12, %s13_s12  }
   0x2   : > { %p137_p1 = scmp.lt.s32.totalorder %s884_s12, 3 }
   0x4   : > { %p138_p2 = pnand %p799_p0, %p137_p1 }
   0x5   : > { %p161_p3 = scmp.lt.s32.totalorder (!%p138_p2), %s795_s13, 1 }
   0x6   : > { %141 = sbr.rel (%p138_p2) target bundleno = 283 (0x11b), region = 32 }
   0xb   : > { %v852_v0 = vld [vmem:[%s1081_s1 + $0x8] sm:$0xff]  ;;  %v853_v1 = vld [vmem:[%s1081_s1 + $0x10] sm:$0xff]  ;;  %s1089_s13 = smov (!%p161_p3, %s795_s13), 1  ;;  %vm285_vm0 = vcmask 1041408   ;;  %vm288_vm1 = vcmask 1043458   ;;  %v851_v14 = vld [vmem:[%s1081_s1] sm:$0xff] }
   0xc   : > { %236 = vmatpush.bf16.msra.mxu0 %v852_v0  ;;  %393 = vmatpush.bf16.msra.mxu2 %v853_v1  ;;  %s860_s18 = smul.u32 80, %s1089_s13  ;;  %v854_v15 = vld [vmem:[%s1081_s1 + $0x18] sm:$0xff]  ;;  %vm226_vm2 = vcmask 130048   ;;  %vm307_vm3 = vsmask.f32 1280  ;;  %v855_v48 = vld [vmem:[%s1081_s1 + $0x20] sm:$0xff] }
   0xd   : > { %vm308_vm4 = vsmask.f32 3336  ;;  %270 = vmatpush.bf16.msra.mxu1 %v851_v14  ;;  %429 = vmatpush.bf16.msra.mxu3 %v854_v15  ;;  %vm310_vm5 = vsmask.f32 5392  ;;  %vm312_vm8 = vsmask.f32 7448 }
   0xe   : > { %s926_s21 = scalar_lea.vmem %s1080_s0, %s860_s18  ;;  %vm976_vm6 = vmor %vm307_vm3, %vm308_vm4  ;;  %s850_s11 = sshll.u32 %s1089_s13, 3  ;;  %vm737_vm11 = vcmask 257024  }
   0xf   : > { %v177_v2 = vld [vmem:[%s926_s21 + $0x14] sm:$0x7]  ;;  %v930_v3 = vld [vmem:[%s926_s21 + $0x18] sm:$0x7]  ;;  %v933_v4 = vld [vmem:[%s926_s21 + $0x1c] sm:$0x7]  ;;  %s170_s16 = scalar_lea.vmem %s1083_s3, %s850_s11 }
  0x10   : > { %v936_v5 = vld [vmem:[%s926_s21 + $0x20] sm:$0x7]  ;;  %209 = vst [vmem:[#allocation1] ss:$4 sm:$0xff] %v177_v2  ;;  %v941_v7 = vld [vmem:[%s926_s21 + $0x4] sm:$0x7]  ;;  %vm311_vm7 = vmor %vm976_vm6, %vm310_vm5  ;;  %465 = vmatpush.bf16.msrb.mxu0 %v855_v48 }
  0x11   : > { %v172_v6 = vld [vmem:[%s926_s21] sm:$0x7]  ;;  %212 = vst [vmem:[#allocation1 + $0x1] ss:$4 sm:$0xff] %v930_v3  ;;  %v944_v8 = vld [vmem:[%s926_s21 + $0x8] sm:$0x7]  ;;  %vm990_vm9 = vmor %vm311_vm7, %vm312_vm8 }
  0x12   : > { %215 = vst [vmem:[#allocation1 + $0x2] ss:$4 sm:$0xff] %v933_v4  ;;  %v948_v9 = vld [vmem:[%s926_s21 + $0xc] sm:$0x7]  ;;  %v281_v10 = vrot.slane %v172_v6, 2  ;;  %v282_v11 = vrot.slane %v941_v7, 2 }
  0x13   : > { %218 = vst [vmem:[#allocation1 + $0x3] ss:$4 sm:$0xff] %v936_v5  ;;  %v283_v12 = vrot.slane %v944_v8, 2  ;;  %v284_v13 = vrot.slane %v948_v9, 2  ;;  %v183_v14 = vld [vmem:[%s926_s21 + $0x2c] sm:$0x7] }
  0x14   : > { %v287_v16 = vsel %vm285_vm0, %v172_v6, %v281_v10  ;;  %v289_v17 = vsel %vm288_vm1, %v172_v6, %v281_v10  ;;  %v293_v18 = vsel %vm285_vm0, %v941_v7, %v282_v11  ;;  %v294_v19 = vsel %vm288_vm1, %v941_v7, %v282_v11  ;;  %v856_v11 = vld [vmem:[%s1081_s1 + $0x28] sm:$0xff]  ;;  %v181_v56 = vld [vmem:[%s926_s21 + $0x24] sm:$0x7] }
  0x15   : > { %v298_v20 = vsel %vm285_vm0, %v944_v8, %v283_v12  ;;  %v291_v21 = vrot.slane %v289_v17, 2  ;;  %v299_v22 = vsel %vm288_vm1, %v944_v8, %v283_v12  ;;  %v314_v23 = vshrl.u32 %v287_v16, 16  ;;  %v857_v12 = vld [vmem:[%s1081_s1 + $0x30] sm:$0xff]  ;;  %581 = vmatpush.bf16.msrb.mxu1 %v856_v11 }
  0x16   : > { %v296_v24 = vrot.slane %v294_v19, 2  ;;  %v304_v25 = vsel %vm288_vm1, %v948_v9, %v284_v13  ;;  %v317_v26 = vshll.u32 %v287_v16, 16  ;;  %v327_v27 = vshrl.u32 %v293_v18, 16  ;;  %614 = vmatpush.bf16.msrb.mxu2 %v857_v12  ;;  %v184_v16 = vld [vmem:[%s926_s21 + $0x30] sm:$0x7] }
  0x17   : > { %v303_v28 = vsel %vm285_vm0, %v948_v9, %v284_v13  ;;  %v316_v29 = vrot.slane %v314_v23, 6  ;;  %v330_v30 = vshll.u32 %v293_v18, 16  ;;  %v340_v31 = vshrl.u32 %v298_v20, 16  ;;  %v182_v13 = vld [vmem:[%s926_s21 + $0x28] sm:$0x7] }
  0x18   : > { %v301_v32 = vrot.slane %v299_v22, 2  ;;  %v319_v33 = vrot.slane %v317_v26, 7  ;;  %v329_v34 = vrot.slane %v327_v27, 6  ;;  %v343_v35 = vshll.u32 %v298_v20, 16  ;;  %v185_v17 = vld [vmem:[%s926_s21 + $0x34] sm:$0x7] }
  0x19   : > { %v306_v37 = vrot.slane %v304_v25, 2  ;;  %v332_v39 = vrot.slane %v330_v30, 7  ;;  %v342_v40 = vrot.slane %v340_v31, 6  ;;  %v323_v42 = vshll.u32 %v291_v21, 16 }
  0x1a   : > { %v219_v36 = vld.sshfl [vmem:[#allocation1] sm:$0xff pattern:$0x73625140]  ;;  %v320_v41 = vor.u32 %v319_v33, %v316_v29  ;;  %v345_v43 = vrot.slane %v343_v35, 7  ;;  %v353_v44 = vshrl.u32 %v303_v28, 16  ;;  %v336_v46 = vshll.u32 %v296_v24, 16 }
  0x1b   : > { %807 = vmatmul.msk.bf16.vlgmr.msra.gmra.mxu0 %vm226_vm2, %v219_v36  ;;  %244 = vst [vmem:[#allocation1] ss:$4 sm:$0xff] %v172_v6  ;;  %v333_v45 = vor.u32 %v332_v39, %v329_v34  ;;  %v356_v47 = vshll.u32 %v303_v28, 16  ;;  %v349_v50 = vshll.u32 %v301_v32, 16  ;;  %v362_v53 = vshll.u32 %v306_v37, 16  ;;  %v858_v28 = vld [vmem:[%s1081_s1 + $0x38] sm:$0xff] }
  0x1c   : > { %247 = vst [vmem:[#allocation1 + $0x1] ss:$4 sm:$0xff] %v941_v7  ;;  %v346_v49 = vor.u32 %v345_v43, %v342_v40  ;;  %v355_v51 = vrot.slane %v353_v44, 6  ;;  %v321_v54 = vrot.slane %v320_v41, 2  ;;  %v325_v55 = vrot.slane %v323_v42, 7  ;;  %647 = vmatpush.bf16.msrb.mxu3 %v858_v28 }
  0x1d   : > { %250 = vst [vmem:[#allocation1 + $0x2] ss:$4 sm:$0xff] %v944_v8  ;;  %v358_v52 = vrot.slane %v356_v47, 7  ;;  %v334_v57 = vrot.slane %v333_v45, 2  ;;  %v338_v58 = vrot.slane %v336_v46, 7  ;;  %v351_v61 = vrot.slane %v349_v50, 7 }
  0x1e   : > { %253 = vst [vmem:[#allocation1 + $0x3] ss:$4 sm:$0xff] %v948_v9  ;;  %v347_v60 = vrot.slane %v346_v49, 2  ;;  %v364_v63 = vrot.slane %v362_v53, 7  ;;  %v326_v0 = vsel %vm990_vm9, %v321_v54, %v325_v55  ;;  %v478_v15 = vrot.slane %v182_v13, 2 }
  0x1f   : > { %v359_v59 = vor.u32 %v358_v52, %v355_v51  ;;  %v998_v1 = vsel %vm990_vm9, %v334_v57, %v338_v58  ;;  %v479_v18 = vrot.slane %v183_v14, 2  ;;  %v480_v19 = vrot.slane %v184_v16, 2  ;;  %v186_v37 = vld [vmem:[%s926_s21 + $0x3c] sm:$0x7]  ;;  %v187_v40 = vld [vmem:[%s926_s21 + $0x40] sm:$0x7] }
  0x20   : > { %v1002_v6 = vsel %vm990_vm9, %v347_v60, %v351_v61  ;;  %v481_v20 = vrot.slane %v185_v17, 2  ;;  %v483_v22 = vsel %vm285_vm0, %v182_v13, %v478_v15  ;;  %v484_v29 = vsel %vm288_vm1, %v182_v13, %v478_v15  ;;  %v188_v45 = vld [vmem:[%s926_s21 + $0x44] sm:$0x7]  ;;  %v189_v49 = vld [vmem:[%s926_s21 + $0x48] sm:$0x7] }
  0x21   : > { %v360_v62 = vrot.slane %v359_v59, 2  ;;  %v488_v23 = vsel %vm285_vm0, %v183_v14, %v479_v18  ;;  %v493_v24 = vsel %vm285_vm0, %v184_v16, %v480_v19  ;;  %v502_v26 = vshrl.u32 %v483_v22, 16  ;;  %v176_v57 = vld [vmem:[%s926_s21 + $0x10] sm:$0x7] }
  0x22   : > { %v498_v25 = vsel %vm285_vm0, %v185_v17, %v481_v20  ;;  %v505_v27 = vshll.u32 %v483_v22, 16  ;;  %v489_v30 = vsel %vm288_vm1, %v183_v14, %v479_v18  ;;  %v515_v31 = vshrl.u32 %v488_v23, 16 }
  0x23   : > { %v1006_v10 = vsel %vm990_vm9, %v360_v62, %v364_v63  ;;  %v518_v32 = vshll.u32 %v488_v23, 16  ;;  %v494_v33 = vsel %vm288_vm1, %v184_v16, %v480_v19  ;;  %v528_v34 = vshrl.u32 %v493_v24, 16 }
  0x24   : > { %v531_v35 = vshll.u32 %v493_v24, 16  ;;  %v541_v36 = vshrl.u32 %v498_v25, 16  ;;  %v499_v38 = vsel %vm288_vm1, %v185_v17, %v481_v20  ;;  %v544_v39 = vshll.u32 %v498_v25, 16 }
  0x25   : > { %v254_v2 = vld.sshfl [vmem:[#allocation1] sm:$0xff pattern:$0x73625140]  ;;  %v486_v41 = vrot.slane %v484_v29, 2  ;;  %v491_v42 = vrot.slane %v489_v30, 2  ;;  %v504_v43 = vrot.slane %v502_v26, 6 }
  0x26   : > { %367 = vst [vmem:[#allocation1] ss:$4 sm:$0xff] %v326_v0  ;;  %812 = vmatmul.msk.bf16.vlgmr.msra.gmra.mxu1 %vm226_vm2, %v254_v2  ;;  %v507_v44 = vrot.slane %v505_v27, 7  ;;  %v496_v46 = vrot.slane %v494_v33, 2  ;;  %v517_v47 = vrot.slane %v515_v31, 6  ;;  %v520_v48 = vrot.slane %v518_v32, 7 }
  0x27   : > { %370 = vst [vmem:[#allocation1 + $0x1] ss:$4 sm:$0xff] %v998_v1  ;;  %v501_v50 = vrot.slane %v499_v38, 2  ;;  %v530_v51 = vrot.slane %v528_v34, 6  ;;  %v533_v52 = vrot.slane %v531_v35, 7  ;;  %v543_v53 = vrot.slane %v541_v36, 6 }
  0x28   : > { %373 = vst [vmem:[#allocation1 + $0x2] ss:$4 sm:$0xff] %v1002_v6  ;;  %v546_v55 = vrot.slane %v544_v39, 7  ;;  %v508_v58 = vor.u32 %v507_v44, %v504_v43  ;;  %v511_v59 = vshll.u32 %v486_v41, 16  ;;  %v524_v60 = vshll.u32 %v491_v42, 16 }
  0x29   : > { %376 = vst [vmem:[#allocation1 + $0x3] ss:$4 sm:$0xff] %v1006_v10  ;;  %v657_v61 = vrot.slane %v176_v57, 2  ;;  %v521_v62 = vor.u32 %v520_v48, %v517_v47  ;;  %v534_v63 = vor.u32 %v533_v52, %v530_v51  ;;  %v537_v0 = vshll.u32 %v496_v46, 16 }
  0x2a   : > { %v547_v11 = vor.u32 %v546_v55, %v543_v53  ;;  %v550_v12 = vshll.u32 %v501_v50, 16  ;;  %v526_v18 = vrot.slane %v524_v60, 7 }
  0x2b   : > { %v659_v2 = vsel %vm285_vm0, %v176_v57, %v657_v61  ;;  %v660_v19 = vsel %vm288_vm1, %v176_v57, %v657_v61  ;;  %v522_v20 = vrot.slane %v521_v62, 2  ;;  %v535_v24 = vrot.slane %v534_v63, 2 }
  0x2c   : > { %v666_v15 = vshll.u32 %v659_v2, 16  ;;  %v539_v25 = vrot.slane %v537_v0, 7  ;;  %v548_v26 = vrot.slane %v547_v11, 2  ;;  %v552_v27 = vrot.slane %v550_v12, 7 }
  0x2d   : > { %v527_v31 = vsel %vm990_vm9, %v522_v20, %v526_v18 }
  0x2e   : > { %v668_v23 = vrot.slane %v666_v15, 7  ;;  %v540_v35 = vsel %vm990_vm9, %v535_v24, %v539_v25  ;;  %v553_v36 = vsel %vm990_vm9, %v548_v26, %v552_v27 }
  0x30   : > { %v377_v21 = vld.sshfl [vmem:[#allocation1] sm:$0xff pattern:$0x73625140] }
  0x31   : > { %817 = vmatmul.msk.bf16.vlgmr.msra.gmra.mxu2 %vm226_vm2, %v377_v21  ;;  %403 = vst [vmem:[#allocation1] ss:$4 sm:$0xff] %v182_v13  ;;  %v859_v13 = vld [vmem:[%s1081_s1 + $0x40] sm:$0xff]  ;;  %v662_v21 = vrot.slane %v660_v19, 2 }
  0x32   : > { %406 = vst [vmem:[#allocation1 + $0x1] ss:$4 sm:$0xff] %v183_v14  ;;  %v663_v14 = vshrl.u32 %v659_v2, 16  ;;  %700 = vmatpush.bf16.msra.mxu0 %v859_v13 }
  0x33   : > { %409 = vst [vmem:[#allocation1 + $0x2] ss:$4 sm:$0xff] %v184_v16  ;;  %v509_v16 = vrot.slane %v508_v58, 2  ;;  %v672_v29 = vshll.u32 %v662_v21, 16 }
  0x34   : > { %412 = vst [vmem:[#allocation1 + $0x3] ss:$4 sm:$0xff] %v185_v17  ;;  %v513_v17 = vrot.slane %v511_v59, 7  ;;  %v665_v22 = vrot.slane %v663_v14, 6  ;;  %v869_v59 = vld [vmem:[%s1082_s2] ss:$0 sm:$0xff] }
  0x35   : > { %v674_v33 = vrot.slane %v672_v29, 7 }
  0x36   : > { %v669_v28 = vor.u32 %v668_v23, %v665_v22  ;;  %v514_v30 = vsel %vm990_vm9, %v509_v16, %v513_v17 }
  0x38   : > { %v670_v32 = vrot.slane %v669_v28, 2 }
  0x3b   : > { %v413_v54 = vld.sshfl [vmem:[#allocation1] sm:$0xff pattern:$0x73625140] }
  0x3c   : > { %822 = vmatmul.msk.bf16.vlgmr.msra.gmra.mxu3 %vm226_vm2, %v413_v54  ;;  %439 = vst [vmem:[#allocation1] ss:$4 sm:$0xff] %v186_v37  ;;  %v675_v37 = vsel %vm990_vm9, %v670_v32, %v674_v33 }
  0x3d   : > { %442 = vst [vmem:[#allocation1 + $0x1] ss:$4 sm:$0xff] %v187_v40 }
  0x3e   : > { %445 = vst [vmem:[#allocation1 + $0x2] ss:$4 sm:$0xff] %v188_v45 }
  0x3f   : > { %448 = vst [vmem:[#allocation1 + $0x3] ss:$4 sm:$0xff] %v189_v49 }
  0x46   : > { %v449_v34 = vld.sshfl [vmem:[#allocation1] sm:$0xff pattern:$0x73625140] }
  0x47   : > { %827 = vmatmul.msk.bf16.vlgmr.msrb.gmra.mxu0 %vm226_vm2, %v449_v34  ;;  %555 = vst [vmem:[#allocation1] ss:$4 sm:$0xff] %v514_v30 }
  0x48   : > { %558 = vst [vmem:[#allocation1 + $0x1] ss:$4 sm:$0xff] %v527_v31 }
  0x49   : > { %561 = vst [vmem:[#allocation1 + $0x2] ss:$4 sm:$0xff] %v540_v35 }
  0x4a   : > { %564 = vst [vmem:[#allocation1 + $0x3] ss:$4 sm:$0xff] %v553_v36 }
  0x51   : > { %v565_v38 = vld.sshfl [vmem:[#allocation1] sm:$0xff pattern:$0x73625140] }
  0x52   : > { %832 = vmatmul.msk.bf16.vlgmr.msrb.gmra.mxu1 %vm226_vm2, %v565_v38  ;;  %590 = vst [vmem:[#allocation1] ss:$4 sm:$0xff] %v941_v7 }
  0x53   : > { %592 = vst [vmem:[#allocation1 + $0x1] ss:$4 sm:$0xff] %v944_v8 }
  0x54   : > { %594 = vst [vmem:[#allocation1 + $0x2] ss:$4 sm:$0xff] %v948_v9 }
  0x55   : > { %597 = vst [vmem:[#allocation1 + $0x3] ss:$4 sm:$0xff] %v176_v57 }
  0x5c   : > { %v598_v39 = vld.sshfl [vmem:[#allocation1] sm:$0xff pattern:$0x73625140] }
  0x5d   : > { %837 = vmatmul.msk.bf16.vlgmr.msrb.gmra.mxu2 %vm226_vm2, %v598_v39  ;;  %623 = vst [vmem:[#allocation1] ss:$4 sm:$0xff] %v930_v3 }
  0x5e   : > { %625 = vst [vmem:[#allocation1 + $0x1] ss:$4 sm:$0xff] %v933_v4 }
  0x5f   : > { %627 = vst [vmem:[#allocation1 + $0x2] ss:$4 sm:$0xff] %v936_v5 }
  0x60   : > { %630 = vst [vmem:[#allocation1 + $0x3] ss:$4 sm:$0xff] %v181_v56 }
  0x67   : > { %v631_v40 = vld.sshfl [vmem:[#allocation1] sm:$0xff pattern:$0x73625140] }
  0x68   : > { %842 = vmatmul.msk.bf16.vlgmr.msrb.gmra.mxu3 %vm226_vm2, %v631_v40  ;;  %676 = vst [vmem:[#allocation1] ss:$4 sm:$0xff] %v998_v1 }
  0x69   : > { %678 = vst [vmem:[#allocation1 + $0x1] ss:$4 sm:$0xff] %v1002_v6 }
  0x6a   : > { %680 = vst [vmem:[#allocation1 + $0x2] ss:$4 sm:$0xff] %v1006_v10 }
  0x6b   : > { %683 = vst [vmem:[#allocation1 + $0x3] ss:$4 sm:$0xff] %v675_v37 }
  0x72   : > { %v684_v7 = vld.sshfl [vmem:[#allocation1] sm:$0xff pattern:$0x73625140] }
  0x73   : > { %847 = vmatmul.msk.bf16.vlgmr.msra.gmra.mxu0 %vm226_vm2, %v684_v7 }
  0x98   : > { %v238_v3 = vpop.f32.mrf.mxu0 }
  0xa0   : > { %v240_v9 = vpop.f32.mrf.mxu0 }
  0xa3   : > { %v272_v8 = vpop.f32.mrf.mxu1 }
  0xa4   : > { %v273_v41 = vadd.f32 %v272_v8, %v238_v3 }
  0xab   : > { %v274_v42 = vpop.f32.mrf.mxu1 }
  0xac   : > { %v275_v6 = vadd.f32 %v274_v42, %v240_v9 }
  0xb4   : > { %v395_v4 = vpop.f32.mrf.mxu2 }
  0xb5   : > { %v400_v43 = vadd.f32 %v395_v4, %v273_v41 }
  0xbc   : > { %v397_v45 = vpop.f32.mrf.mxu2 }
  0xbd   : > { %v401_v50 = vadd.f32 %v397_v45, %v275_v6 }
  0xbf   : > { %v431_v5 = vpop.f32.mrf.mxu3 }
  0xc0   : > { %v436_v46 = vadd.f32 %v431_v5, %v400_v43 }
  0xc4   : > { %v467_v44 = vpop.f32.mrf.mxu0 }
  0xc5   : > { %v472_v48 = vadd.f32 %v467_v44, %v436_v46 }
  0xc7   : > { %v433_v1 = vpop.f32.mrf.mxu3 }
  0xc8   : > { %v437_v52 = vadd.f32 %v433_v1, %v401_v50 }
  0xcc   : > { %v469_v49 = vpop.f32.mrf.mxu0 }
  0xcd   : > { %v473_v58 = vadd.f32 %v469_v49, %v437_v52 }
  0xcf   : > { %v583_v47 = vpop.f32.mrf.mxu1 }
  0xd0   : > { %v588_v51 = vadd.f32 %v583_v47, %v472_v48 }
  0xd7   : > { %v585_v57 = vpop.f32.mrf.mxu1 }
  0xd8   : > { %v589_v62 = vadd.f32 %v585_v57, %v473_v58 }
  0xe0   : > { %v616_v10 = vpop.f32.mrf.mxu2 }
  0xe1   : > { %v621_v53 = vadd.f32 %v616_v10, %v588_v51 }
  0xe8   : > { %v618_v60 = vpop.f32.mrf.mxu2 }
  0xe9   : > { %v622_v0 = vadd.f32 %v618_v60, %v589_v62 }
  0xeb   : > { %v649_v54 = vpop.f32.mrf.mxu3 }
  0xec   : > { %v654_v55 = vadd.f32 %v649_v54, %v621_v53 }
  0xf0   : > { %v702_v61 = vpop.f32.mrf.mxu0 }
  0xf1   : > { %v707_v63 = vadd.f32 %v702_v61, %v654_v55 }
  0xf3   : > { %v713_v2 = vadd.f32 %v869_v59, %v707_v63  ;;  %v651_v11 = vpop.f32.mrf.mxu3 }
  0xf4   : > { %v655_v13 = vadd.f32 %v651_v11, %v622_v0 }
  0xf5   : > { %v715_v12 = vand.u32 2147483647, %v713_v2  ;;  %vm727_vm10 = vcmp.ge.f32.partialorder %v713_v2, 0.0 }
  0xf7   : > { %v717_v14 = vsub.f32 0.0, %v715_v12 }
  0xf8   : > { %v704_v15 = vpop.f32.mrf.mxu0 }
  0xf9   : > { %v719_v16 = vmul.f32 1.442695, %v717_v14  ;;  %v708_v17 = vadd.f32 %v704_v15, %v655_v13 }
  0xfb   : > { %870 = vpow2.f32 %v719_v16  ;;  %v714_v18 = vadd.f32 %v869_v59, %v708_v17 }
  0xfd   : > { %v716_v19 = vand.u32 2147483647, %v714_v18  ;;  %vm728_vm12 = vcmp.ge.f32.partialorder %v714_v18, 0.0 }
  0xff   : > { %v718_v20 = vsub.f32 0.0, %v716_v19 }
 0x101   : > { %v871_v21 = vpop.eup %870  ;;  %v721_v22 = vmul.f32 1.442695, %v718_v20 }
 0x102   : > { %v723_v23 = vadd.f32 1.0, %v871_v21 }
 0x103   : > { %872 = vpow2.f32 %v721_v22 }
 0x104   : > { %874 = vrcp.f32 %v723_v23 }
 0x109   : > { %v873_v24 = vpop.eup %872 }
 0x10a   : > { %v875_v25 = vpop.eup %874  ;;  %v724_v26 = vadd.f32 1.0, %v873_v24 }
 0x10b   : > { %v729_v27 = vmul.f32 %v875_v25, %v871_v21 }
 0x10c   : > { %876 = vrcp.f32 %v724_v26 }
 0x10d   : > { %v731_v28 = vsel %vm727_vm10, %v875_v25, %v729_v27 }
 0x10e   : > { %v733_v29 = vmul.f32 %v731_v28, %v713_v2 }
 0x110   : > { %v735_v30 = vpack.c.bf16 %v733_v29, %v733_v29 }
 0x112   : > { %v877_v31 = vpop.eup %876  ;;  %738 = vst.msk [vmem:[%s170_s16] sm:$0xf] %vm737_vm11, %v735_v30 }
 0x113   : > { %v730_v32 = vmul.f32 %v877_v31, %v873_v24 }
 0x115   : > { %v732_v33 = vsel %vm728_vm12, %v877_v31, %v730_v32 }
 0x116   : > { %v734_v34 = vmul.f32 %v732_v33, %v714_v18 }
 0x118   : > { %v736_v35 = vpack.c.bf16 %v734_v34, %v734_v34 }
 0x11a   : > { %739 = vst.msk [vmem:[%s170_s16 + $0x4] sm:$0xf] %vm737_vm11, %v736_v35 }
 0x11b PF: > { %s13_s12 = sadd.s32 1, %s884_s12  }
 0x11c   : > { %p10_p4 = scmp.ge.s32.totalorder %s13_s12, 4  }
 0x11e   :  { %12 = sbr.rel (!%p10_p4) target bundleno = 1 (0x1), region = 89 }

// kernel: forward.3
= control target key start
LH: loop header
LB: loop body
LE: loop exit
PB: predicated region body
PF: predicated region fallthrough
CT: control target
= control target key end

     0   :  { %s1372_s12 = smov 0   ;;  %s1824_s0 = inlined_call_operand.vmem [shape: bf16[2,4,9,9,8], index: 0, kind: input, shape index: {}]   ;;  %s1825_s1 = inlined_call_operand.vmem [shape: bf16[9,8,16], index: 1, kind: input, shape index: {}]   ;;  %s1826_s2 = inlined_call_operand.vmem [shape: f32[1,16], index: 2, kind: input, shape index: {}]   ;;  %s1827_s3 = inlined_call_operand.vmem [shape: bf16[2,64,16], index: 3, kind: output, shape index: {}]  }
   0x1 LB: > { %s1212_s13 = sadd.s32 4294967295, %s1350_s12   ;;  %p1216_p0 = scmp.ge.s32.totalorder %s1350_s12, 1  ;;  %s1350_s12 = sphi %s1372_s12, %s13_s12  }
   0x2   : > { %p137_p1 = scmp.lt.s32.totalorder %s1350_s12, 3 }
   0x4   : > { %p138_p2 = pnand %p1216_p0, %p137_p1 }
   0x5   : > { %p161_p3 = scmp.lt.s32.totalorder (!%p138_p2), %s1212_s13, 1 }
   0x6   : > { %141 = sbr.rel (%p138_p2) target bundleno = 328 (0x148), region = 32 }
   0xb   : > { %v224_v0 = vld [vmem:[%s1825_s1 + $0x4] sm:$0xf]  ;;  %vm265_vm0 = vcmask 1043456   ;;  %v225_v2 = vld [vmem:[%s1825_s1 + $0x8] sm:$0xf]  ;;  %s1831_s13 = smov (!%p161_p3, %s1212_s13), 1 }
   0xc   : > { %v267_v1 = vsel %vm265_vm0, %v224_v0, 0  ;;  %v226_v3 = vld [vmem:[%s1825_s1 + $0xc] sm:$0xf]  ;;  %v502_v4 = vsel %vm265_vm0, %v225_v2, 0  ;;  %v223_v6 = vld [vmem:[%s1825_s1] sm:$0xf] }
   0xd   : > { %1299 = vmatpush.bf16.msra.mxu1 %v267_v1  ;;  %1300 = vmatpush.bf16.msra.mxu2 %v267_v1  ;;  %v574_v5 = vsel %vm265_vm0, %v226_v3, 0  ;;  %v331_v7 = vsel %vm265_vm0, %v223_v6, 0  ;;  %v227_v8 = vld [vmem:[%s1825_s1 + $0x10] sm:$0xf]  ;;  %s1302_s24 = smul.u32 288, %s1831_s13  ;;  %vm252_vm1 = vcmask 64512  }
   0xe   : > { %1301 = vmatpush.bf16.msra.mxu3 %v267_v1  ;;  %276 = vmatpush.bf16.msra.mxu0 %v267_v1  ;;  %v646_v9 = vsel %vm265_vm0, %v227_v8, 0  ;;  %v229_v10 = vld [vmem:[%s1825_s1 + $0x18] sm:$0xf]  ;;  %vm362_vm2 = vsmask.f32 3328  ;;  %s1290_s11 = sshll.u32 %s1831_s13, 5 }
   0xf   : > { %v880_v11 = vsel %vm265_vm0, %v229_v10, 0  ;;  %s1410_s29 = scalar_lea.vmem %s1824_s0, %s1302_s24  ;;  %v230_v12 = vld [vmem:[%s1825_s1 + $0x1c] sm:$0xf]  ;;  %v228_v13 = vld [vmem:[%s1825_s1 + $0x14] sm:$0xf]  ;;  %s1774_s13 = scalar_lea.vmem %s1827_s3, %s1290_s11  ;;  %vm1148_vm6 = vcmask 125952  }
  0x10   : > { %v192_v14 = vld [vmem:[%s1410_s29 + $0x58] sm:$0xf]  ;;  %v1420_v15 = vld [vmem:[%s1410_s29 + $0x60] sm:$0xf]  ;;  %v1423_v16 = vld [vmem:[%s1410_s29 + $0x68] sm:$0xf] }
  0x11   : > { %511 = vmatpush.bf16.msrb.mxu2 %v502_v4  ;;  %340 = vmatpush.bf16.msrb.mxu1 %v331_v7  ;;  %v242_v17 = vunpack.c.l.b16 %v192_v14  ;;  %v243_v18 = vunpack.c.l.b16 %v1420_v15  ;;  %v1427_v19 = vld [vmem:[%s1410_s29 + $0x70] sm:$0xf]  ;;  %v244_v20 = vunpack.c.l.b16 %v1423_v16  ;;  %v1431_v21 = vld [vmem:[%s1410_s29 + $0x78] sm:$0xf]  ;;  %v1434_v22 = vld [vmem:[%s1410_s29 + $0x80] sm:$0xf] }
  0x12   : > { %583 = vmatpush.bf16.msrb.mxu3 %v574_v5  ;;  %655 = vmatpush.bf16.msrb.mxu0 %v646_v9  ;;  %v245_v23 = vunpack.c.l.b16 %v1427_v19  ;;  %v246_v24 = vunpack.c.l.b16 %v1431_v21  ;;  %v247_v25 = vunpack.c.l.b16 %v1434_v22  ;;  %v190_v26 = vld [vmem:[%s1410_s29 + $0x48] sm:$0xf]  ;;  %v191_v27 = vld [vmem:[%s1410_s29 + $0x50] sm:$0xf]  ;;  %v1442_v28 = vld [vmem:[%s1410_s29] sm:$0xf] }
  0x13   : > { %v249_v29 = vpack.c.b16 %v243_v18, %v242_v17  ;;  %v240_v30 = vunpack.c.l.b16 %v190_v26  ;;  %v241_v31 = vunpack.c.l.b16 %v191_v27  ;;  %v1447_v32 = vld [vmem:[%s1410_s29 + $0x8] sm:$0xf]  ;;  %v173_v33 = vld [vmem:[%s1410_s29 + $0x4] sm:$0x1]  ;;  %v938_v34 = vsel %vm265_vm0, %v230_v12, 0 }
  0x14   : > { %v250_v35 = vpack.c.b16 %v245_v23, %v244_v20  ;;  %v251_v36 = vpack.c.b16 %v247_v25, %v246_v24  ;;  %v366_v37 = vshrl.u32 %v1442_v28, 16  ;;  %v175_v38 = vld [vmem:[%s1410_s29 + $0xc] sm:$0x1]  ;;  %v822_v39 = vsel %vm265_vm0, %v228_v13, 0  ;;  %v231_v44 = vld [vmem:[%s1825_s1 + $0x20] sm:$0xf] }
  0x15   : > { %1221 = vmatmul.msk.bf16.vlgmr.msra.gmra.mxu1 %vm252_vm1, %v249_v29  ;;  %v248_v40 = vpack.c.b16 %v241_v31, %v240_v30  ;;  %v1463_v41 = vpack.c.b16 %v242_v17, %v241_v31  ;;  %v369_v42 = vshll.u32 %v1442_v28, 16  ;;  %v380_v43 = vshrl.u32 %v1447_v32, 16  ;;  %v1475_v51 = vld [vmem:[%s1410_s29 + $0x10] sm:$0xf]  ;;  %v1479_v54 = vld [vmem:[%s1410_s29 + $0x18] sm:$0xf] }
  0x16   : > { %1222 = vmatmul.msk.bf16.vlgmr.msra.gmra.mxu2 %vm252_vm1, %v250_v35  ;;  %1223 = vmatmul.msk.bf16.vlgmr.msra.gmra.mxu3 %vm252_vm1, %v251_v36  ;;  %v368_v45 = vrot.slane %v366_v37, 4  ;;  %v383_v46 = vshll.u32 %v1447_v32, 16  ;;  %vm363_vm3 = vsmask.f32 7440  ;;  %v375_v47 = vshll.u32 %v173_v33, 16 }
  0x17   : > { %1220 = vmatmul.msk.bf16.vlgmr.msra.gmra.mxu0 %vm252_vm1, %v248_v40  ;;  %v371_v48 = vrot.slane %v369_v42, 5  ;;  %v382_v49 = vrot.slane %v380_v43, 4  ;;  %v389_v50 = vshll.u32 %v175_v38, 16  ;;  %889 = vmatpush.bf16.msra.mxu2 %v880_v11  ;;  %v1009_v53 = vsel %vm265_vm0, %v231_v44, 0  ;;  %vm1483_vm4 = vmor %vm362_vm2, %vm363_vm3  ;;  %v1234_v5 = vld [vmem:[%s1410_s29 + $0x90] sm:$0xf] }
  0x18   : > { %v385_v52 = vrot.slane %v383_v46, 5  ;;  %947 = vmatpush.bf16.msra.mxu3 %v938_v34  ;;  %831 = vmatpush.bf16.msra.mxu1 %v822_v39  ;;  %v377_v56 = vrot.slane %v375_v47, 5  ;;  %v394_v60 = vshrl.u32 %v1475_v51, 16  ;;  %v397_v62 = vshll.u32 %v1475_v51, 16  ;;  %v1291_v8 = vld [vmem:[%s1410_s29 + $0x94] sm:$0xf0] }
  0x19   : > { %v372_v55 = vor.u32 %v371_v48, %v368_v45  ;;  %1018 = vmatpush.bf16.msra.mxu0 %v1009_v53  ;;  %v391_v59 = vrot.slane %v389_v50, 5  ;;  %v408_v63 = vshrl.u32 %v1479_v54, 16  ;;  %v411_v0 = vshll.u32 %v1479_v54, 16  ;;  %v1254_v9 = vld [vmem:[%s1410_s29 + $0xd8] sm:$0xf] }
  0x1a   : > { %v386_v58 = vor.u32 %v385_v52, %v382_v49  ;;  %v306_v2 = vunpack.c.l.b16 %v1442_v28  ;;  %v307_v3 = vunpack.c.l.b16 %v1447_v32  ;;  %v396_v10 = vrot.slane %v394_v60, 4  ;;  %v1295_v12 = vld [vmem:[%s1410_s29 + $0xdc] sm:$0xf0]  ;;  %v177_v26 = vld [vmem:[%s1410_s29 + $0x14] sm:$0x1] }
  0x1b   : > { %v373_v61 = vrot.slane %v372_v55, 4  ;;  %v399_v13 = vrot.slane %v397_v62, 5  ;;  %v410_v14 = vrot.slane %v408_v63, 4  ;;  %v413_v17 = vrot.slane %v411_v0, 5  ;;  %v179_v27 = vld [vmem:[%s1410_s29 + $0x1c] sm:$0x1] }
  0x1c   : > { %v387_v1 = vrot.slane %v386_v58, 4  ;;  %v314_v28 = vpack.c.b16 %v307_v3, %v306_v2  ;;  %v1235_v30 = vor.u32 %v1291_v8, %v1234_v5  ;;  %v1255_v31 = vor.u32 %v1295_v12, %v1254_v9  ;;  %v1513_v42 = vld [vmem:[%s1410_s29 + $0x20] sm:$0xf]  ;;  %v1516_v43 = vld [vmem:[%s1410_s29 + $0x28] sm:$0xf] }
  0x1d   : > { %v378_v4 = vsel %vm1483_vm4, %v373_v61, %v377_v56  ;;  %v400_v33 = vor.u32 %v399_v13, %v396_v10  ;;  %v403_v34 = vshll.u32 %v177_v26, 16  ;;  %v414_v35 = vor.u32 %v413_v17, %v410_v14  ;;  %v1238_v56 = vld [vmem:[%s1410_s29 + $0xa0] sm:$0xf]  ;;  %v1292_v58 = vld [vmem:[%s1410_s29 + $0xa4] sm:$0xf0] }
  0x1e   : > { %v392_v6 = vsel %vm1483_vm4, %v387_v1, %v391_v59  ;;  %v477_v7 = vunpack.c.l.b16 %v378_v4  ;;  %v417_v36 = vshll.u32 %v179_v27, 16  ;;  %v422_v44 = vshrl.u32 %v1513_v42, 16  ;;  %v1258_v59 = vld [vmem:[%s1410_s29 + $0xe8] sm:$0xf]  ;;  %v1296_v60 = vld [vmem:[%s1410_s29 + $0xec] sm:$0xf0] }
  0x1f   : > { %v1500_v11 = vunpack.c.l.b16 %v392_v6  ;;  %v401_v37 = vrot.slane %v400_v33, 4  ;;  %v405_v38 = vrot.slane %v403_v34, 5  ;;  %v415_v39 = vrot.slane %v414_v35, 4  ;;  %v181_v1 = vld [vmem:[%s1410_s29 + $0x24] sm:$0x1] }
  0x20   : > { %v419_v40 = vrot.slane %v417_v36, 5  ;;  %v425_v45 = vshll.u32 %v1513_v42, 16  ;;  %v436_v48 = vshrl.u32 %v1516_v43, 16  ;;  %v439_v49 = vshll.u32 %v1516_v43, 16  ;;  %v183_v2 = vld [vmem:[%s1410_s29 + $0x2c] sm:$0x1] }
  0x21   : > { %v485_v29 = vpack.c.b16 %v1500_v11, %v477_v7  ;;  %v406_v46 = vsel %vm1483_vm4, %v401_v37, %v405_v38  ;;  %v308_v50 = vunpack.c.l.b16 %v1475_v51  ;;  %v309_v52 = vunpack.c.l.b16 %v1479_v54  ;;  %v1548_v13 = vld [vmem:[%s1410_s29 + $0x30] sm:$0xf]  ;;  %v1551_v14 = vld [vmem:[%s1410_s29 + $0x38] sm:$0xf]  ;;  %v211_v54 = vld [vmem:[%s1410_s29 + $0xc0] sm:$0xf] }
  0x22   : > { %v420_v47 = vsel %vm1483_vm4, %v415_v39, %v419_v40  ;;  %v1528_v53 = vunpack.c.l.b16 %v406_v46  ;;  %v424_v61 = vrot.slane %v422_v44, 4  ;;  %v427_v62 = vrot.slane %v425_v45, 5  ;;  %v209_v32 = vld [vmem:[%s1410_s29 + $0xb8] sm:$0xf]  ;;  %v213_v15 = vld [vmem:[%s1410_s29 + $0xc8] sm:$0xf] }
  0x23   : > { %v1530_v55 = vunpack.c.l.b16 %v420_v47  ;;  %v438_v63 = vrot.slane %v436_v48, 4  ;;  %v441_v0 = vrot.slane %v439_v49, 5  ;;  %v315_v4 = vpack.c.b16 %v309_v52, %v308_v50  ;;  %v185_v47 = vld [vmem:[%s1410_s29 + $0x34] sm:$0x1]  ;;  %v187_v48 = vld [vmem:[%s1410_s29 + $0x3c] sm:$0x1] }
  0x24   : > { %v1239_v6 = vor.u32 %v1292_v58, %v1238_v56  ;;  %v1259_v7 = vor.u32 %v1296_v60, %v1258_v59  ;;  %v428_v8 = vor.u32 %v427_v62, %v424_v61  ;;  %v431_v9 = vshll.u32 %v181_v1, 16  ;;  %v1242_v49 = vld [vmem:[%s1410_s29 + $0xb0] sm:$0xf]  ;;  %v1293_v56 = vld [vmem:[%s1410_s29 + $0xb4] sm:$0xf0] }
  0x25   : > { %1224 = vmatmul.msk.bf16.vlgmr.msrb.gmra.mxu1 %vm252_vm1, %v314_v28  ;;  %v486_v5 = vpack.c.b16 %v1530_v55, %v1528_v53  ;;  %v442_v10 = vor.u32 %v441_v0, %v438_v63  ;;  %v445_v12 = vshll.u32 %v183_v2, 16  ;;  %v467_v33 = vshll.u32 %v1551_v14, 16  ;;  %v1262_v59 = vld [vmem:[%s1410_s29 + $0xf8] sm:$0xf]  ;;  %v1297_v60 = vld [vmem:[%s1410_s29 + $0xfc] sm:$0xf0] }
  0x26   : > { %1228 = vmatmul.msk.bf16.vlgmr.msrb.gmra.mxu2 %vm252_vm1, %v485_v29  ;;  %1248 = vmatmul.msk.bf16.vlgmr.msrb.gmra.mxu3 %vm252_vm1, %v1235_v30  ;;  %v429_v17 = vrot.slane %v428_v8, 4  ;;  %v433_v26 = vrot.slane %v431_v9, 5  ;;  %v450_v29 = vshrl.u32 %v1548_v13, 16  ;;  %v453_v30 = vshll.u32 %v1548_v13, 16  ;;  %v199_v9 = vld [vmem:[%s1410_s29 + $0x90] sm:$0xf] }
  0x27   : > { %1268 = vmatmul.msk.bf16.vlgmr.msrb.gmra.mxu0 %vm252_vm1, %v1255_v31  ;;  %v443_v27 = vrot.slane %v442_v10, 4  ;;  %v447_v28 = vrot.slane %v445_v12, 5  ;;  %v464_v31 = vshrl.u32 %v1551_v14, 16  ;;  %v310_v36 = vunpack.c.l.b16 %v1513_v42  ;;  %v201_v10 = vld [vmem:[%s1410_s29 + $0x98] sm:$0xf] }
  0x28   : > { %v434_v34 = vsel %vm1483_vm4, %v429_v17, %v433_v26  ;;  %v311_v37 = vunpack.c.l.b16 %v1516_v43  ;;  %v452_v38 = vrot.slane %v450_v29, 4  ;;  %v455_v39 = vrot.slane %v453_v30, 5 }
  0x29   : > { %v448_v35 = vsel %vm1483_vm4, %v443_v27, %v447_v28  ;;  %v466_v40 = vrot.slane %v464_v31, 4  ;;  %v469_v44 = vrot.slane %v467_v33, 5  ;;  %v1564_v45 = vunpack.c.l.b16 %v434_v34 }
  0x2a   : > { %v1566_v46 = vunpack.c.l.b16 %v448_v35  ;;  %v316_v58 = vpack.c.b16 %v311_v37, %v310_v36  ;;  %v456_v61 = vor.u32 %v455_v39, %v452_v38  ;;  %v459_v62 = vshll.u32 %v185_v47, 16  ;;  %v1246_v35 = vld [vmem:[%s1410_s29 + $0xc0] sm:$0xf]  ;;  %v1294_v38 = vld [vmem:[%s1410_s29 + $0xc4] sm:$0xf0] }
  0x2b   : > { %v470_v63 = vor.u32 %v469_v44, %v466_v40  ;;  %v473_v0 = vshll.u32 %v187_v48, 16  ;;  %v1243_v2 = vor.u32 %v1293_v56, %v1242_v49  ;;  %v686_v26 = vshrl.u32 %v199_v9, 16  ;;  %v200_v48 = vld [vmem:[%s1410_s29 + $0x94] sm:$0x1]  ;;  %v202_v49 = vld [vmem:[%s1410_s29 + $0x9c] sm:$0x1] }
  0x2c   : > { %v487_v1 = vpack.c.b16 %v1566_v46, %v1564_v45  ;;  %v689_v27 = vshll.u32 %v199_v9, 16  ;;  %v700_v28 = vshrl.u32 %v201_v10, 16  ;;  %v703_v29 = vshll.u32 %v201_v10, 16  ;;  %v1266_v56 = vld [vmem:[%s1410_s29 + $0x108] sm:$0xf] }
  0x2d   : > { %v475_v8 = vrot.slane %v473_v0, 5  ;;  %v312_v30 = vunpack.c.l.b16 %v1548_v13  ;;  %v313_v31 = vunpack.c.l.b16 %v1551_v14  ;;  %v688_v39 = vrot.slane %v686_v26, 4 }
  0x2e   : > { %v691_v40 = vrot.slane %v689_v27, 5  ;;  %v702_v44 = vrot.slane %v700_v28, 4  ;;  %v705_v47 = vrot.slane %v703_v29, 5  ;;  %v770_v42 = vshrl.u32 %v211_v54, 16 }
  0x30   : > { %v706_v0 = vor.u32 %v705_v47, %v702_v44  ;;  %v204_v47 = vld [vmem:[%s1410_s29 + $0xa4] sm:$0x1] }
  0x35   : > { %1225 = vmatmul.msk.bf16.gmra.mxu1 %vm252_vm1, %v315_v4  ;;  %v1263_v4 = vor.u32 %v1297_v60, %v1262_v59  ;;  %v317_v59 = vpack.c.b16 %v313_v31, %v312_v30 }
  0x36   : > { %1229 = vmatmul.msk.bf16.gmra.mxu2 %vm252_vm1, %v486_v5  ;;  %1249 = vmatmul.msk.bf16.gmra.mxu3 %vm252_vm1, %v1239_v6  ;;  %v457_v5 = vrot.slane %v456_v61, 4  ;;  %v461_v6 = vrot.slane %v459_v62, 5  ;;  %v1247_v61 = vor.u32 %v1294_v38, %v1246_v35  ;;  %v692_v62 = vor.u32 %v691_v40, %v688_v39 }
  0x37   : > { %1269 = vmatmul.msk.bf16.gmra.mxu0 %vm252_vm1, %v1259_v7  ;;  %v471_v7 = vrot.slane %v470_v63, 4  ;;  %v695_v63 = vshll.u32 %v200_v48, 16  ;;  %v206_v48 = vld [vmem:[%s1410_s29 + $0xac] sm:$0x1] }
  0x38   : > { %v462_v12 = vsel %vm1483_vm4, %v457_v5, %v461_v6  ;;  %v205_v5 = vld [vmem:[%s1410_s29 + $0xa8] sm:$0xf]  ;;  %v693_v6 = vrot.slane %v692_v62, 4  ;;  %v992_v62 = vpack.c.b16 %v1528_v53, %v1500_v11  ;;  %v756_v53 = vshrl.u32 %v209_v32, 16 }
  0x39   : > { %v476_v17 = vsel %vm1483_vm4, %v471_v7, %v475_v8  ;;  %v1592_v33 = vunpack.c.l.b16 %v462_v12  ;;  %v697_v7 = vrot.slane %v695_v63, 5  ;;  %v707_v8 = vrot.slane %v706_v0, 4 }
  0x3a   : > { %v1594_v34 = vunpack.c.l.b16 %v476_v17  ;;  %v728_v17 = vshrl.u32 %v205_v5, 16  ;;  %v731_v26 = vshll.u32 %v205_v5, 16  ;;  %v759_v5 = vshll.u32 %v209_v32, 16 }
  0x3b   : > { %v698_v27 = vsel %vm1483_vm4, %v693_v6, %v697_v7 }
  0x3c   : > { %v488_v60 = vpack.c.b16 %v1594_v34, %v1592_v33  ;;  %v730_v38 = vrot.slane %v728_v17, 4  ;;  %v733_v39 = vrot.slane %v731_v26, 5  ;;  %v797_v40 = vunpack.c.l.b16 %v698_v27  ;;  %v210_v17 = vld [vmem:[%s1410_s29 + $0xbc] sm:$0x1] }
  0x45   : > { %1226 = vmatmul.msk.bf16.gmra.mxu1 %vm252_vm1, %v316_v58  ;;  %v1298_v58 = vld [vmem:[%s1410_s29 + $0x10c] sm:$0xf0] }
  0x46   : > { %1230 = vmatmul.msk.bf16.gmra.mxu2 %vm252_vm1, %v487_v1  ;;  %1250 = vmatmul.msk.bf16.gmra.mxu3 %vm252_vm1, %v1243_v2  ;;  %v709_v1 = vshll.u32 %v202_v49, 16  ;;  %v1267_v2 = vor.u32 %v1298_v58, %v1266_v56  ;;  %v723_v56 = vshll.u32 %v204_v47, 16  ;;  %v734_v58 = vor.u32 %v733_v39, %v730_v38 }
  0x47   : > { %1270 = vmatmul.msk.bf16.gmra.mxu0 %vm252_vm1, %v1263_v4  ;;  %v203_v4 = vld [vmem:[%s1410_s29 + $0xa0] sm:$0xf]  ;;  %v864_v38 = vpack.c.b16 %v310_v36, %v309_v52  ;;  %v922_v39 = vpack.c.b16 %v244_v20, %v243_v18  ;;  %v773_v52 = vshll.u32 %v211_v54, 16  ;;  %v787_v36 = vshll.u32 %v213_v15, 16 }
  0x48   : > { %v711_v9 = vrot.slane %v709_v1, 5  ;;  %v714_v10 = vshrl.u32 %v203_v4, 16  ;;  %v717_v12 = vshll.u32 %v203_v4, 16  ;;  %v725_v0 = vrot.slane %v723_v56, 5  ;;  %v207_v4 = vld [vmem:[%s1410_s29 + $0xb0] sm:$0xf] }
  0x49   : > { %v735_v1 = vrot.slane %v734_v58, 4  ;;  %v742_v11 = vshrl.u32 %v207_v4, 16  ;;  %v188_v20 = vld [vmem:[%s1410_s29 + $0x40] sm:$0xf] }
  0x4a   : > { %v712_v28 = vsel %vm1483_vm4, %v707_v8, %v711_v9  ;;  %v716_v29 = vrot.slane %v714_v10, 4  ;;  %v719_v35 = vrot.slane %v717_v12, 5  ;;  %v758_v9 = vrot.slane %v756_v53, 4  ;;  %v208_v12 = vld [vmem:[%s1410_s29 + $0xb4] sm:$0x1] }
  0x4b   : > { %v798_v44 = vunpack.c.l.b16 %v712_v28  ;;  %v744_v8 = vrot.slane %v742_v11, 4  ;;  %v761_v10 = vrot.slane %v759_v5, 5  ;;  %v751_v28 = vshll.u32 %v208_v12, 16  ;;  %v189_v11 = vld [vmem:[%s1410_s29 + $0x44] sm:$0x1] }
  0x4c   : > { %v720_v49 = vor.u32 %v719_v35, %v716_v29  ;;  %v765_v35 = vshll.u32 %v210_v17, 16  ;;  %v981_v56 = vshll.u32 %v188_v20, 16  ;;  %v862_v12 = vunpack.c.l.b16 %v188_v20 }
  0x4d   : > { %v762_v29 = vor.u32 %v761_v10, %v758_v9  ;;  %v753_v47 = vrot.slane %v751_v28, 5 }
  0x4e   : > { %v721_v63 = vrot.slane %v720_v49, 4  ;;  %v767_v49 = vrot.slane %v765_v35, 5 }
  0x50   : > { %v726_v51 = vsel %vm1483_vm4, %v721_v63, %v725_v0  ;;  %v789_v63 = vrot.slane %v787_v36, 5  ;;  %v212_v0 = vld [vmem:[%s1410_s29 + $0xc4] sm:$0x1] }
  0x51   : > { %v799_v6 = vunpack.c.l.b16 %v726_v51  ;;  %v865_v51 = vpack.c.b16 %v312_v30, %v311_v37  ;;  %v779_v53 = vshll.u32 %v212_v0, 16  ;;  %v198_v30 = vld [vmem:[%s1410_s29 + $0x88] sm:$0xf] }
  0x52   : > { %v920_v17 = vunpack.c.l.b16 %v198_v30 }
  0x53   : > { %v781_v21 = vrot.slane %v779_v53, 5 }
  0x54   : > { %v924_v35 = vpack.c.b16 %v920_v17, %v247_v25 }
  0x55   : > { %1227 = vmatmul.msk.bf16.gmra.mxu1 %vm252_vm1, %v317_v59  ;;  %v737_v59 = vshll.u32 %v206_v48, 16  ;;  %v763_v48 = vrot.slane %v762_v29, 4  ;;  %v866_v29 = vpack.c.b16 %v862_v12, %v313_v31 }
  0x56   : > { %1231 = vmatmul.msk.bf16.gmra.mxu2 %vm252_vm1, %v488_v60  ;;  %1251 = vmatmul.msk.bf16.gmra.mxu3 %vm252_vm1, %v1247_v61  ;;  %v805_v60 = vpack.c.b16 %v798_v44, %v797_v40  ;;  %v863_v61 = vpack.c.b16 %v308_v50, %v307_v3  ;;  %v745_v50 = vshll.u32 %v207_v4, 16  ;;  %v993_v40 = vpack.c.b16 %v1564_v45, %v1530_v55 }
  0x57   : > { %1271 = vmatmul.msk.bf16.gmra.mxu0 %vm252_vm1, %v1267_v2  ;;  %v739_v2 = vrot.slane %v737_v59, 5  ;;  %v768_v18 = vsel %vm1483_vm4, %v763_v48, %v767_v49  ;;  %v784_v55 = vshrl.u32 %v213_v15, 16  ;;  %v978_v45 = vshrl.u32 %v188_v20, 16 }
  0x58   : > { %v802_v59 = vunpack.c.l.b16 %v768_v18  ;;  %v983_v4 = vrot.slane %v981_v56, 5 }
  0x59   : > { %v740_v3 = vsel %vm1483_vm4, %v735_v1, %v739_v2  ;;  %v214_v1 = vld [vmem:[%s1410_s29 + $0xcc] sm:$0x1]  ;;  %v980_v2 = vrot.slane %v978_v45, 4 }
  0x5a   : > { %v800_v7 = vunpack.c.l.b16 %v740_v3  ;;  %v923_v3 = vpack.c.b16 %v246_v24, %v245_v23 }
  0x5c   : > { %v806_v26 = vpack.c.b16 %v800_v7, %v799_v6  ;;  %v793_v6 = vshll.u32 %v214_v1, 16  ;;  %v994_v7 = vpack.c.b16 %v1592_v33, %v1566_v46 }
  0x5e   : > { %v795_v24 = vrot.slane %v793_v6, 5 }
  0x65   : > { %1272 = vmatmul.msk.bf16.vlgmr.msra.gmra.mxu1 %vm252_vm1, %v805_v60  ;;  %v772_v60 = vrot.slane %v770_v42, 4 }
  0x66   : > { %1276 = vmatmul.msk.bf16.vlgmr.msra.gmra.mxu2 %vm252_vm1, %v863_v61  ;;  %1280 = vmatmul.msk.bf16.vlgmr.msra.gmra.mxu3 %vm252_vm1, %v1463_v41  ;;  %v747_v41 = vrot.slane %v745_v50, 5  ;;  %v775_v61 = vrot.slane %v773_v52, 5 }
  0x67   : > { %1284 = vmatmul.msk.bf16.vlgmr.msra.gmra.mxu0 %vm252_vm1, %v992_v62  ;;  %v786_v62 = vrot.slane %v784_v55, 4 }
  0x68   : > { %v748_v27 = vor.u32 %v747_v41, %v744_v8  ;;  %v776_v50 = vor.u32 %v775_v61, %v772_v60  ;;  %v984_v8 = vor.u32 %v983_v4, %v980_v2  ;;  %v987_v41 = vshll.u32 %v189_v11, 16 }
  0x69   : > { %v790_v5 = vor.u32 %v789_v63, %v786_v62 }
  0x6a   : > { %v749_v44 = vrot.slane %v748_v27, 4  ;;  %v777_v19 = vrot.slane %v776_v50, 4  ;;  %v985_v43 = vrot.slane %v984_v8, 4  ;;  %v989_v13 = vrot.slane %v987_v41, 5 }
  0x6b   : > { %v791_v23 = vrot.slane %v790_v5, 4 }
  0x6c   : > { %v754_v16 = vsel %vm1483_vm4, %v749_v44, %v753_v47  ;;  %v782_v37 = vsel %vm1483_vm4, %v777_v19, %v781_v21  ;;  %v990_v33 = vsel %vm1483_vm4, %v985_v43, %v989_v13 }
  0x6d   : > { %v801_v58 = vunpack.c.l.b16 %v754_v16  ;;  %v796_v46 = vsel %vm1483_vm4, %v791_v23, %v795_v24  ;;  %v803_v9 = vunpack.c.l.b16 %v782_v37 }
  0x6e   : > { %v804_v10 = vunpack.c.l.b16 %v796_v46 }
  0x6f   : > { %v807_v32 = vpack.c.b16 %v802_v59, %v801_v58 }
  0x70   : > { %v808_v27 = vpack.c.b16 %v804_v10, %v803_v9  ;;  %v1738_v10 = vld [vmem:[%s1826_s2] ss:$0 sm:$0xff] }
  0x75   : > { %1273 = vmatmul.msk.bf16.gmra.mxu1 %vm252_vm1, %v806_v26  ;;  %v991_v26 = vunpack.c.l.b16 %v990_v33 }
  0x76   : > { %1277 = vmatmul.msk.bf16.gmra.mxu2 %vm252_vm1, %v864_v38  ;;  %1281 = vmatmul.msk.bf16.gmra.mxu3 %vm252_vm1, %v922_v39 }
  0x77   : > { %1285 = vmatmul.msk.bf16.gmra.mxu0 %vm252_vm1, %v993_v40  ;;  %v995_v38 = vpack.c.b16 %v991_v26, %v1594_v34 }
  0x85   : > { %1274 = vmatmul.msk.bf16.gmra.mxu1 %vm252_vm1, %v807_v32 }
  0x86   : > { %1278 = vmatmul.msk.bf16.gmra.mxu2 %vm252_vm1, %v865_v51  ;;  %1282 = vmatmul.msk.bf16.gmra.mxu3 %vm252_vm1, %v923_v3 }
  0x87   : > { %1286 = vmatmul.msk.bf16.gmra.mxu0 %vm252_vm1, %v994_v7 }
  0x92   : > { %v283_v28 = vpop.f32.mrf.mxu1 }
  0x94   : > { %v278_v39 = vpop.f32.mrf.mxu0 }
  0x95   : > { %1275 = vmatmul.msk.bf16.gmra.mxu1 %vm252_vm1, %v808_v27 }
  0x96   : > { %1279 = vmatmul.msk.bf16.gmra.mxu2 %vm252_vm1, %v866_v29  ;;  %1283 = vmatmul.msk.bf16.gmra.mxu3 %vm252_vm1, %v924_v35 }
  0x97   : > { %1287 = vmatmul.msk.bf16.gmra.mxu0 %vm252_vm1, %v995_v38 }
  0x99   : > { %v1693_v57 = vpop.f32.mrf.mxu2  ;;  %v1695_v40 = vpop.f32.mrf.mxu3 }
  0x9a   : > { %v1697_v14 = vpop.f32.mrf.mxu1 }
  0x9c   : > { %v280_v31 = vpop.f32.mrf.mxu0 }
  0xa1   : > { %v1699_v22 = vpop.f32.mrf.mxu2  ;;  %v1701_v25 = vpop.f32.mrf.mxu3 }
  0xa2   : > { %v342_v34 = vpop.f32.mrf.mxu1 }
  0xa3   : > { %v343_v11 = vadd.f32 %v342_v34, %v278_v39 }
  0xa4   : > { %v657_v44 = vpop.f32.mrf.mxu0 }
  0xa9   : > { %v513_v47 = vpop.f32.mrf.mxu2  ;;  %v585_v48 = vpop.f32.mrf.mxu3 }
  0xaa   : > { %v344_v49 = vpop.f32.mrf.mxu1  ;;  %v533_v53 = vadd.f32 %v513_v47, %v343_v11 }
  0xab   : > { %v345_v41 = vadd.f32 %v344_v49, %v280_v31 }
  0xac   : > { %v659_v54 = vpop.f32.mrf.mxu0  ;;  %v605_v7 = vadd.f32 %v585_v48, %v533_v53 }
  0xae   : > { %v677_v23 = vadd.f32 %v657_v44, %v605_v7 }
  0xb1   : > { %v515_v15 = vpop.f32.mrf.mxu2  ;;  %v587_v16 = vpop.f32.mrf.mxu3 }
  0xb2   : > { %v347_v18 = vpop.f32.mrf.mxu1  ;;  %v534_v21 = vadd.f32 %v515_v15, %v345_v41 }
  0xb3   : > { %v348_v33 = vadd.f32 %v347_v18, %v283_v28 }
  0xb4   : > { %v662_v20 = vpop.f32.mrf.mxu0  ;;  %v606_v37 = vadd.f32 %v587_v16, %v534_v21 }
  0xb6   : > { %v678_v27 = vadd.f32 %v659_v54, %v606_v37 }
  0xb9   : > { %v518_v42 = vpop.f32.mrf.mxu2  ;;  %v590_v52 = vpop.f32.mrf.mxu3 }
  0xba   : > { %v349_v55 = vpop.f32.mrf.mxu1  ;;  %v535_v17 = vadd.f32 %v518_v42, %v348_v33 }
  0xbb   : > { %v350_v47 = vadd.f32 %v349_v55, %v1697_v14 }
  0xbc   : > { %v1703_v36 = vpop.f32.mrf.mxu0  ;;  %v607_v31 = vadd.f32 %v590_v52, %v535_v17 }
  0xbe   : > { %v679_v54 = vadd.f32 %v662_v20, %v607_v31 }
  0xc1   : > { %v520_v45 = vpop.f32.mrf.mxu2  ;;  %v592_v56 = vpop.f32.mrf.mxu3 }
  0xc2   : > { %v352_v58 = vpop.f32.mrf.mxu1  ;;  %v536_v16 = vadd.f32 %v520_v45, %v350_v47 }
  0xc3   : > { %v353_v14 = vadd.f32 %v352_v58, %v1693_v57 }
  0xc4   : > { %v1705_v59 = vpop.f32.mrf.mxu0 }
  0xc9   : > { %v1707_v60 = vpop.f32.mrf.mxu2  ;;  %v1709_v61 = vpop.f32.mrf.mxu3 }
  0xca   : > { %v1711_v62 = vpop.f32.mrf.mxu1  ;;  %v537_v20 = vadd.f32 %v1707_v60, %v353_v14 }
  0xcb   : > { %v355_v60 = vadd.f32 %v1711_v62, %v1699_v22 }
  0xcc   : > { %v1713_v63 = vpop.f32.mrf.mxu0  ;;  %v609_v57 = vadd.f32 %v1709_v61, %v537_v20 }
  0xce   : > { %v681_v31 = vadd.f32 %v1705_v59, %v609_v57 }
  0xd1   : > { %v1715_v0 = vpop.f32.mrf.mxu2  ;;  %v1717_v1 = vpop.f32.mrf.mxu3 }
  0xd2   : > { %v1719_v2 = vpop.f32.mrf.mxu1 }
  0xd4   : > { %v1721_v4 = vpop.f32.mrf.mxu0 }
  0xd9   : > { %v1723_v32 = vpop.f32.mrf.mxu2  ;;  %v1725_v51 = vpop.f32.mrf.mxu3 }
  0xda   : > { %v1727_v3 = vpop.f32.mrf.mxu1 }
  0xdc   : > { %v1729_v50 = vpop.f32.mrf.mxu0 }
  0xe1   : > { %v1731_v5 = vpop.f32.mrf.mxu2  ;;  %v1733_v6 = vpop.f32.mrf.mxu3 }
  0xe2   : > { %v833_v8 = vpop.f32.mrf.mxu1 }
  0xe3   : > { %v853_v24 = vadd.f32 %v833_v8, %v677_v23  ;;  %v608_v8 = vadd.f32 %v592_v56, %v536_v16 }
  0xe4   : > { %v1020_v19 = vpop.f32.mrf.mxu0 }
  0xe5   : > { %v680_v37 = vadd.f32 %v1703_v36, %v608_v8 }
  0xe9   : > { %v891_v43 = vpop.f32.mrf.mxu2  ;;  %v949_v13 = vpop.f32.mrf.mxu3 }
  0xea   : > { %v911_v46 = vadd.f32 %v891_v43, %v853_v24  ;;  %v835_v30 = vpop.f32.mrf.mxu1 }
  0xeb   : > { %v854_v35 = vadd.f32 %v835_v30, %v678_v27 }
  0xec   : > { %v969_v9 = vadd.f32 %v949_v13, %v911_v46  ;;  %v1022_v12 = vpop.f32.mrf.mxu0 }
  0xee   : > { %v1040_v26 = vadd.f32 %v1020_v19, %v969_v9 }
  0xf0   : > { %v1741_v29 = vadd.f32 %v1738_v10, %v1040_v26 }
  0xf1   : > { %v893_v38 = vpop.f32.mrf.mxu2  ;;  %v951_v39 = vpop.f32.mrf.mxu3 }
  0xf2   : > { %v1060_v34 = vand.u32 2147483647, %v1741_v29  ;;  %v912_v28 = vadd.f32 %v893_v38, %v854_v35  ;;  %v838_v44 = vpop.f32.mrf.mxu1  ;;  %v538_v35 = vadd.f32 %v1715_v0, %v355_v60  ;;  %vm1108_vm5 = vcmp.ge.f32.partialorder %v1741_v29, 0.0 }
  0xf3   : > { %v855_v53 = vadd.f32 %v838_v44, %v679_v54 }
  0xf4   : > { %v1068_v48 = vsub.f32 0.0, %v1060_v34  ;;  %v970_v49 = vadd.f32 %v951_v39, %v912_v28  ;;  %v1025_v15 = vpop.f32.mrf.mxu0  ;;  %v610_v0 = vadd.f32 %v1717_v1, %v538_v35 }
  0xf6   : > { %v1076_v18 = vmul.f32 1.442695, %v1068_v48  ;;  %v1041_v42 = vadd.f32 %v1022_v12, %v970_v49 }
  0xf8   : > { %1312 = vpow2.f32 %v1076_v18  ;;  %v1746_v11 = vadd.f32 %v1738_v10, %v1041_v42  ;;  %v358_v42 = vadd.f32 %v1719_v2, %v1695_v40 }
  0xf9   : > { %v896_v7 = vpop.f32.mrf.mxu2  ;;  %v954_v52 = vpop.f32.mrf.mxu3 }
  0xfa   : > { %v1061_v41 = vand.u32 2147483647, %v1746_v11  ;;  %v913_v19 = vadd.f32 %v896_v7, %v855_v53  ;;  %v840_v21 = vpop.f32.mrf.mxu1  ;;  %vm1109_vm7 = vcmp.ge.f32.partialorder %v1746_v11, 0.0 }
  0xfb   : > { %v856_v30 = vadd.f32 %v840_v21, %v680_v37  ;;  %v360_v37 = vadd.f32 %v1727_v3, %v1701_v25 }
  0xfc   : > { %v1069_v55 = vsub.f32 0.0, %v1061_v41  ;;  %v971_v23 = vadd.f32 %v954_v52, %v913_v19  ;;  %v1027_v45 = vpop.f32.mrf.mxu0  ;;  %v539_v52 = vadd.f32 %v1723_v32, %v358_v42 }
  0xfd   : > { %v540_v57 = vadd.f32 %v1731_v5, %v360_v37 }
  0xfe   : > { %v1313_v24 = vpop.eup %1312  ;;  %v1078_v43 = vmul.f32 1.442695, %v1069_v55  ;;  %v1042_v13 = vadd.f32 %v1025_v15, %v971_v23 }
  0xff   : > { %v1092_v46 = vadd.f32 1.0, %v1313_v24  ;;  %v612_v5 = vadd.f32 %v1733_v6, %v540_v57 }
 0x100   : > { %1314 = vpow2.f32 %v1078_v43  ;;  %v1753_v56 = vadd.f32 %v1738_v10, %v1042_v13 }
 0x101   : > { %1316 = vrcp.f32 %v1092_v46  ;;  %v898_v33 = vpop.f32.mrf.mxu2  ;;  %v956_v9 = vpop.f32.mrf.mxu3 }
 0x102   : > { %v1062_v58 = vand.u32 2147483647, %v1753_v56  ;;  %v914_v12 = vadd.f32 %v898_v33, %v856_v30  ;;  %v843_v17 = vpop.f32.mrf.mxu1  ;;  %vm1110_vm8 = vcmp.ge.f32.partialorder %v1753_v56, 0.0 }
 0x103   : > { %v857_v48 = vadd.f32 %v843_v17, %v681_v31 }
 0x104   : > { %v1070_v36 = vsub.f32 0.0, %v1062_v58  ;;  %v972_v26 = vadd.f32 %v956_v9, %v914_v12  ;;  %v1030_v34 = vpop.f32.mrf.mxu0 }
 0x106   : > { %v1315_v27 = vpop.eup %1314  ;;  %v1080_v38 = vmul.f32 1.442695, %v1070_v36  ;;  %v1043_v39 = vadd.f32 %v1027_v45, %v972_v26  ;;  %v611_v45 = vadd.f32 %v1725_v51, %v539_v52 }
 0x107   : > { %v1317_v28 = vpop.eup %1316  ;;  %v1093_v61 = vadd.f32 1.0, %v1315_v27 }
 0x108   : > { %v1116_v44 = vmul.f32 %v1317_v28, %v1313_v24  ;;  %1318 = vpow2.f32 %v1080_v38  ;;  %v1762_v47 = vadd.f32 %v1738_v10, %v1043_v39  ;;  %v683_v51 = vadd.f32 %v1721_v4, %v611_v45 }
 0x109   : > { %1320 = vrcp.f32 %v1093_v61  ;;  %v901_v22 = vpop.f32.mrf.mxu2  ;;  %v959_v62 = vpop.f32.mrf.mxu3 }
 0x10a   : > { %v1124_v49 = vsel %vm1108_vm5, %v1317_v28, %v1116_v44  ;;  %v1063_v59 = vand.u32 2147483647, %v1762_v47  ;;  %v915_v15 = vadd.f32 %v901_v22, %v857_v48  ;;  %v845_v16 = vpop.f32.mrf.mxu1  ;;  %vm1111_vm9 = vcmp.ge.f32.partialorder %v1762_v47, 0.0 }
 0x10b   : > { %v1132_v18 = vmul.f32 %v1124_v49, %v1741_v29  ;;  %v682_v29 = vadd.f32 %v1713_v63, %v610_v0 }
 0x10c   : > { %v1071_v54 = vsub.f32 0.0, %v1063_v59  ;;  %v973_v53 = vadd.f32 %v959_v62, %v915_v15  ;;  %v1032_v55 = vpop.f32.mrf.mxu0  ;;  %v684_v62 = vadd.f32 %v1729_v50, %v612_v5 }
 0x10d   : > { %v1140_v1 = vpack.c.bf16 %v1132_v18, %v1132_v18  ;;  %v858_v14 = vadd.f32 %v845_v16, %v682_v29 }
 0x10e   : > { %v1319_v7 = vpop.eup %1318  ;;  %v1082_v8 = vmul.f32 1.442695, %v1071_v54  ;;  %v1044_v41 = vadd.f32 %v1030_v34, %v973_v53 }
 0x10f   : > { %v1321_v19 = vpop.eup %1320  ;;  %1149 = vst.msk [vmem:[%s1774_s13] sm:$0xf] %vm1148_vm6, %v1140_v1  ;;  %v1094_v40 = vadd.f32 1.0, %v1319_v7 }
 0x110   : > { %v1117_v2 = vmul.f32 %v1321_v19, %v1315_v27  ;;  %1322 = vpow2.f32 %v1082_v8  ;;  %v1781_v21 = vadd.f32 %v1738_v10, %v1044_v41 }
 0x111   : > { %1324 = vrcp.f32 %v1094_v40  ;;  %v903_v23 = vpop.f32.mrf.mxu2  ;;  %v961_v32 = vpop.f32.mrf.mxu3 }
 0x112   : > { %v1125_v63 = vsel %vm1109_vm7, %v1321_v19, %v1117_v2  ;;  %v1064_v24 = vand.u32 2147483647, %v1781_v21  ;;  %v916_v20 = vadd.f32 %v903_v23, %v858_v14  ;;  %v848_v13 = vpop.f32.mrf.mxu1  ;;  %vm1112_vm10 = vcmp.ge.f32.partialorder %v1781_v21, 0.0 }
 0x113   : > { %v1133_v43 = vmul.f32 %v1125_v63, %v1746_v11  ;;  %v859_v25 = vadd.f32 %v848_v13, %v683_v51 }
 0x114   : > { %v1072_v46 = vsub.f32 0.0, %v1064_v24  ;;  %v974_v30 = vadd.f32 %v961_v32, %v916_v20  ;;  %v1035_v39 = vpop.f32.mrf.mxu0 }
 0x115   : > { %v1141_v33 = vpack.c.bf16 %v1133_v43, %v1133_v43 }
 0x116   : > { %v1323_v9 = vpop.eup %1322  ;;  %v1084_v58 = vmul.f32 1.442695, %v1072_v46  ;;  %v1045_v12 = vadd.f32 %v1032_v55, %v974_v30 }
 0x117   : > { %v1325_v17 = vpop.eup %1324  ;;  %1150 = vst.msk [vmem:[%s1774_s13 + $0x4] sm:$0xf] %vm1148_vm6, %v1141_v33  ;;  %v1095_v60 = vadd.f32 1.0, %v1323_v9 }
 0x118   : > { %v1118_v36 = vmul.f32 %v1325_v17, %v1319_v7  ;;  %1326 = vpow2.f32 %v1084_v58  ;;  %v1794_v11 = vadd.f32 %v1738_v10, %v1045_v12 }
 0x119   : > { %1328 = vrcp.f32 %v1095_v60  ;;  %v906_v3 = vpop.f32.mrf.mxu2  ;;  %v964_v26 = vpop.f32.mrf.mxu3 }
 0x11a   : > { %v1126_v27 = vsel %vm1110_vm8, %v1325_v17, %v1118_v36  ;;  %v1065_v4 = vand.u32 2147483647, %v1794_v11  ;;  %v917_v35 = vadd.f32 %v906_v3, %v859_v25  ;;  %v850_v61 = vpop.f32.mrf.mxu1  ;;  %vm1113_vm11 = vcmp.ge.f32.partialorder %v1794_v11, 0.0 }
 0x11b   : > { %v1134_v38 = vmul.f32 %v1126_v27, %v1753_v56  ;;  %v860_v15 = vadd.f32 %v850_v61, %v684_v62 }
 0x11c   : > { %v1073_v31 = vsub.f32 0.0, %v1065_v4  ;;  %v975_v34 = vadd.f32 %v964_v26, %v917_v35  ;;  %v1037_v52 = vpop.f32.mrf.mxu0 }
 0x11d   : > { %v1142_v28 = vpack.c.bf16 %v1134_v38, %v1134_v38 }
 0x11e   : > { %v1327_v44 = vpop.eup %1326  ;;  %v1086_v48 = vmul.f32 1.442695, %v1073_v31  ;;  %v1046_v22 = vadd.f32 %v1035_v39, %v975_v34 }
 0x11f   : > { %v1329_v0 = vpop.eup %1328  ;;  %1151 = vst.msk [vmem:[%s1774_s13 + $0x8] sm:$0xf] %vm1148_vm6, %v1142_v28  ;;  %v1096_v6 = vadd.f32 1.0, %v1327_v44 }
 0x120   : > { %v1119_v49 = vmul.f32 %v1329_v0, %v1323_v9  ;;  %1330 = vpow2.f32 %v1086_v48  ;;  %v1058_v59 = vadd.f32 %v1738_v10, %v1046_v22 }
 0x121   : > { %1332 = vrcp.f32 %v1096_v6  ;;  %v908_v56 = vpop.f32.mrf.mxu2  ;;  %v966_v50 = vpop.f32.mrf.mxu3 }
 0x122   : > { %v1127_v16 = vsel %vm1111_vm9, %v1329_v0, %v1119_v49  ;;  %v1066_v18 = vand.u32 2147483647, %v1058_v59  ;;  %v918_v42 = vadd.f32 %v908_v56, %v860_v15  ;;  %vm1114_vm12 = vcmp.ge.f32.partialorder %v1058_v59, 0.0 }
 0x123   : > { %v1135_v54 = vmul.f32 %v1127_v16, %v1762_v47 }
 0x124   : > { %v1074_v53 = vsub.f32 0.0, %v1066_v18  ;;  %v976_v1 = vadd.f32 %v966_v50, %v918_v42 }
 0x125   : > { %v1143_v7 = vpack.c.bf16 %v1135_v54, %v1135_v54 }
 0x126   : > { %v1331_v8 = vpop.eup %1330  ;;  %v1088_v41 = vmul.f32 1.442695, %v1074_v53  ;;  %v1047_v29 = vadd.f32 %v1037_v52, %v976_v1 }
 0x127   : > { %v1333_v19 = vpop.eup %1332  ;;  %1152 = vst.msk [vmem:[%s1774_s13 + $0xc] sm:$0xf] %vm1148_vm6, %v1143_v7  ;;  %v1097_v40 = vadd.f32 1.0, %v1331_v8 }
 0x128   : > { %v1120_v2 = vmul.f32 %v1333_v19, %v1327_v44  ;;  %1334 = vpow2.f32 %v1088_v41  ;;  %v1059_v14 = vadd.f32 %v1738_v10, %v1047_v29 }
 0x129   : > { %1336 = vrcp.f32 %v1097_v40 }
 0x12a   : > { %v1128_v47 = vsel %vm1112_vm10, %v1333_v19, %v1120_v2  ;;  %v1067_v55 = vand.u32 2147483647, %v1059_v14  ;;  %vm1115_vm13 = vcmp.ge.f32.partialorder %v1059_v14, 0.0 }
 0x12b   : > { %v1136_v23 = vmul.f32 %v1128_v47, %v1781_v21 }
 0x12c   : > { %v1075_v32 = vsub.f32 0.0, %v1067_v55 }
 0x12d   : > { %v1144_v45 = vpack.c.bf16 %v1136_v23, %v1136_v23 }
 0x12e   : > { %v1335_v63 = vpop.eup %1334  ;;  %v1090_v24 = vmul.f32 1.442695, %v1075_v32 }
 0x12f   : > { %v1337_v20 = vpop.eup %1336  ;;  %1153 = vst.msk [vmem:[%s1774_s13 + $0x10] sm:$0xf] %vm1148_vm6, %v1144_v45  ;;  %v1098_v43 = vadd.f32 1.0, %v1335_v63 }
 0x130   : > { %v1121_v13 = vmul.f32 %v1337_v20, %v1331_v8  ;;  %1338 = vpow2.f32 %v1090_v24 }
 0x131   : > { %1340 = vrcp.f32 %v1098_v43 }
 0x132   : > { %v1129_v10 = vsel %vm1113_vm11, %v1337_v20, %v1121_v13 }
 0x133   : > { %v1137_v37 = vmul.f32 %v1129_v10, %v1794_v11 }
 0x135   : > { %v1145_v46 = vpack.c.bf16 %v1137_v37, %v1137_v37 }
 0x136   : > { %v1339_v21 = vpop.eup %1338 }
 0x137   : > { %v1341_v30 = vpop.eup %1340  ;;  %1154 = vst.msk [vmem:[%s1774_s13 + $0x14] sm:$0xf] %vm1148_vm6, %v1145_v46  ;;  %v1099_v33 = vadd.f32 1.0, %v1339_v21 }
 0x138   : > { %v1122_v9 = vmul.f32 %v1341_v30, %v1335_v63 }
 0x139   : > { %1342 = vrcp.f32 %v1099_v33 }
 0x13a   : > { %v1130_v57 = vsel %vm1114_vm12, %v1341_v30, %v1122_v9 }
 0x13b   : > { %v1138_v58 = vmul.f32 %v1130_v57, %v1058_v59 }
 0x13d   : > { %v1146_v12 = vpack.c.bf16 %v1138_v58, %v1138_v58 }
 0x13f   : > { %v1343_v51 = vpop.eup %1342  ;;  %1155 = vst.msk [vmem:[%s1774_s13 + $0x18] sm:$0xf] %vm1148_vm6, %v1146_v12 }
 0x140   : > { %v1123_v17 = vmul.f32 %v1343_v51, %v1339_v21 }
 0x142   : > { %v1131_v60 = vsel %vm1115_vm13, %v1343_v51, %v1123_v17 }
 0x143   : > { %v1139_v36 = vmul.f32 %v1131_v60, %v1059_v14 }
 0x145   : > { %v1147_v11 = vpack.c.bf16 %v1139_v36, %v1139_v36 }
 0x147   : > { %1156 = vst.msk [vmem:[%s1774_s13 + $0x1c] sm:$0xf] %vm1148_vm6, %v1147_v11 }
 0x148 PF: > { %s13_s12 = sadd.s32 1, %s1350_s12  }
 0x149   : > { %p10_p4 = scmp.ge.s32.totalorder %s13_s12, 4  }
 0x14b   :  { %12 = sbr.rel (!%p10_p4) target bundleno = 1 (0x1), region = 62 }

// kernel: forward.5
= control target key start
LH: loop header
LB: loop body
LE: loop exit
PB: predicated region body
PF: predicated region fallthrough
CT: control target
= control target key end

     0   :  { %s1081_s18 = smov 0   ;;  %s1326_s0 = inlined_call_operand.vmem [shape: bf16[256,32], index: 0, kind: input, shape index: {}]   ;;  %s1327_s1 = inlined_call_operand.vmem [shape: bf16[32,128], index: 1, kind: input, shape index: {}]   ;;  %s1328_s2 = inlined_call_operand.vmem [shape: f32[1,128], index: 2, kind: input, shape index: {}]   ;;  %s1329_s3 = inlined_call_operand.vmem [shape: bf16[128,128], index: 3, kind: input, shape index: {}]   ;;  %s1330_s4 = inlined_call_operand.vmem [shape: f32[1,128], index: 4, kind: input, shape index: {}]   ;;  %s1331_s5 = inlined_call_operand.vmem [shape: f32[16,128], index: 5, kind: output, shape index: {}]  }
   0x1 LB: > { %s1087_s19 = sadd.s32 4294967295, %s1049_s18   ;;  %p849_p0 = scmp.ge.s32.totalorder %s1049_s18, 1  ;;  %s1049_s18 = sphi %s1081_s18, %s15_s18  }
   0x2   : > { %p188_p1 = scmp.lt.s32.totalorder %s1049_s18, 3 }
   0x4   : > { %p189_p2 = pnand %p849_p0, %p188_p1 }
   0x5   : > { %s850_s22 = sshll.u32 (!%p189_p2), %s1087_s19, 4  ;;  %p221_p4 = scmp.lt.s32.totalorder (!%p189_p2), %s1087_s19, 1 }
   0x6   : > { %192 = sbr.rel (%p189_p2) target bundleno = 671 (0x29f), region = 40  ;;  %p216_p3 = scmp.lt.s32.totalorder (!%p189_p2), %s850_s22, 31 }
   0xb   : > { %v944_v0 = vld [vmem:[%s1327_s1 + $0x8] sm:$0xff]  ;;  %v943_v1 = vld [vmem:[%s1327_s1] sm:$0xff]  ;;  %s1333_s22 = smov (!%p216_p3, %s850_s22), 31  ;;  %vm302_vm0 = vcmask 261120   ;;  %s1335_s19 = smov (!%p221_p4, %s1087_s19), 1 }
   0xc   : > { %333 = vmatpush.bf16.msra.mxu0 %v944_v0  ;;  %953 = vmatpush.bf16.msra.mxu2 %v944_v0  ;;  %s851_s25 = sshll.u32 %s1333_s22, 2  ;;  %v1112_v10 = vld [vmem:[%s1328_s2] ss:$0 sm:$0xff]  ;;  %s852_s26 = sshll.u32 %s1335_s19, 3 }
   0xd   : > { %954 = vmatpush.bf16.msra.mxu3 %v944_v0  ;;  %s219_s28 = scalar_lea.vmem %s1326_s0, %s851_s25  ;;  %s224_s29 = scalar_lea.vmem %s1331_s5, %s852_s26 }
   0xe   : > { %v935_v2 = vld [vmem:[%s219_s28] sm:$0xff]  ;;  %v938_v3 = vld [vmem:[%s219_s28 + $0x18] sm:$0xff]  ;;  %v941_v4 = vld [vmem:[%s219_s28 + $0x30] sm:$0xff] }
   0xf   : > { %v936_v5 = vld [vmem:[%s219_s28 + $0x8] sm:$0xff]  ;;  %v939_v6 = vld [vmem:[%s219_s28 + $0x20] sm:$0xff]  ;;  %v942_v7 = vld [vmem:[%s219_s28 + $0x38] sm:$0xff] }
  0x10   : > { %334 = vmatpush.bf16.msra.mxu0 %v943_v1  ;;  %955 = vmatpush.bf16.msra.mxu2 %v943_v1  ;;  %v937_v8 = vld [vmem:[%s219_s28 + $0x10] sm:$0xff]  ;;  %v940_v9 = vld [vmem:[%s219_s28 + $0x28] sm:$0xff] }
  0x11   : > { %956 = vmatpush.bf16.msra.mxu3 %v943_v1 }
  0x13   : > { %893 = vmatmul.msk.bf16.vlgmr.msra.gmra.mxu0 %vm302_vm0, %v935_v2  ;;  %896 = vmatmul.msk.bf16.vlgmr.msra.gmra.mxu2 %vm302_vm0, %v938_v3 }
  0x14   : > { %899 = vmatmul.msk.bf16.vlgmr.msra.gmra.mxu3 %vm302_vm0, %v941_v4 }
  0x23   : > { %894 = vmatmul.msk.bf16.gmra.mxu0 %vm302_vm0, %v936_v5  ;;  %897 = vmatmul.msk.bf16.gmra.mxu2 %vm302_vm0, %v939_v6 }
  0x24   : > { %900 = vmatmul.msk.bf16.gmra.mxu3 %vm302_vm0, %v942_v7 }
  0x33   : > { %895 = vmatmul.msk.bf16.gmra.mxu0 %vm302_vm0, %v937_v8  ;;  %898 = vmatmul.msk.bf16.gmra.mxu2 %vm302_vm0, %v940_v9 }
  0x90   : > { %v336_v11 = vpop.f32.mrf.mxu0 }
  0x91   : > { %v1115_v12 = vadd.f32 %v1112_v10, %v336_v11 }
  0x93   : > { %v376_v13 = vand.u32 2147483647, %v1115_v12  ;;  %vm472_vm1 = vcmp.ge.f32.partialorder %v1115_v12, 0.0 }
  0x95   : > { %v392_v19 = vsub.f32 0.0, %v376_v13 }
  0x96   : > { %v351_v14 = vpop.f32.mrf.mxu2 }
  0x97   : > { %v1119_v15 = vadd.f32 %v1112_v10, %v351_v14  ;;  %v366_v16 = vpop.f32.mrf.mxu3  ;;  %v408_v23 = vmul.f32 1.442695, %v392_v19 }
  0x98   : > { %v338_v17 = vpop.f32.mrf.mxu0  ;;  %v1126_v21 = vadd.f32 %v1112_v10, %v366_v16 }
  0x99   : > { %v1122_v18 = vadd.f32 %v1112_v10, %v338_v17  ;;  %v382_v20 = vand.u32 2147483647, %v1119_v15  ;;  %967 = vpow2.f32 %v408_v23  ;;  %vm478_vm2 = vcmp.ge.f32.partialorder %v1119_v15, 0.0 }
  0x9a   : > { %v388_v26 = vand.u32 2147483647, %v1126_v21  ;;  %vm484_vm8 = vcmp.ge.f32.partialorder %v1126_v21, 0.0 }
  0x9b   : > { %v377_v22 = vand.u32 2147483647, %v1122_v18  ;;  %v398_v24 = vsub.f32 0.0, %v382_v20  ;;  %vm473_vm3 = vcmp.ge.f32.partialorder %v1122_v18, 0.0 }
  0x9c   : > { %v404_v35 = vsub.f32 0.0, %v388_v26 }
  0x9d   : > { %v393_v27 = vsub.f32 0.0, %v377_v22  ;;  %v420_v34 = vmul.f32 1.442695, %v398_v24 }
  0x9e   : > { %v353_v25 = vpop.f32.mrf.mxu2  ;;  %v432_v42 = vmul.f32 1.442695, %v404_v35 }
  0x9f   : > { %v1131_v28 = vadd.f32 %v1112_v10, %v353_v25  ;;  %v368_v29 = vpop.f32.mrf.mxu3  ;;  %v410_v36 = vmul.f32 1.442695, %v393_v27  ;;  %969 = vpow2.f32 %v420_v34  ;;  %v1145_v45 = vpop.eup %967 }
  0xa0   : > { %v1134_v30 = vadd.f32 %v1112_v10, %v368_v29  ;;  %v341_v31 = vpop.f32.mrf.mxu0  ;;  %v440_v54 = vadd.f32 1.0, %v1145_v45 }
  0xa1   : > { %v383_v32 = vand.u32 2147483647, %v1131_v28  ;;  %v1138_v33 = vadd.f32 %v1112_v10, %v341_v31  ;;  %971 = vpow2.f32 %v410_v36  ;;  %vm479_vm4 = vcmp.ge.f32.partialorder %v1131_v28, 0.0 }
  0xa2   : > { %v389_v38 = vand.u32 2147483647, %v1134_v30  ;;  %973 = vpow2.f32 %v432_v42  ;;  %vm485_vm6 = vcmp.ge.f32.partialorder %v1134_v30, 0.0 }
  0xa3   : > { %v378_v37 = vand.u32 2147483647, %v1138_v33  ;;  %v399_v39 = vsub.f32 0.0, %v383_v32  ;;  %vm474_vm5 = vcmp.ge.f32.partialorder %v1138_v33, 0.0 }
  0xa4   : > { %v405_v46 = vsub.f32 0.0, %v389_v38 }
  0xa5   : > { %v394_v40 = vsub.f32 0.0, %v378_v37  ;;  %v422_v50 = vmul.f32 1.442695, %v399_v39  ;;  %v1156_v56 = vpop.eup %969 }
  0xa6   : > { %v356_v41 = vpop.f32.mrf.mxu2  ;;  %v434_v57 = vmul.f32 1.442695, %v405_v46  ;;  %v446_v0 = vadd.f32 1.0, %v1156_v56 }
  0xa7   : > { %v1143_v43 = vadd.f32 %v1112_v10, %v356_v41  ;;  %v371_v44 = vpop.f32.mrf.mxu3  ;;  %v412_v47 = vmul.f32 1.442695, %v394_v40  ;;  %v1159_v59 = vpop.eup %971 }
  0xa8   : > { %v1148_v48 = vadd.f32 %v1112_v10, %v371_v44  ;;  %v343_v49 = vpop.f32.mrf.mxu0  ;;  %v441_v3 = vadd.f32 1.0, %v1159_v59  ;;  %v1169_v7 = vpop.eup %973 }
  0xa9   : > { %v384_v51 = vand.u32 2147483647, %v1143_v43  ;;  %v1153_v53 = vadd.f32 %v1112_v10, %v343_v49  ;;  %975 = vpow2.f32 %v412_v47  ;;  %v452_v17 = vadd.f32 1.0, %v1169_v7 }
  0xaa   : > { %v390_v52 = vand.u32 2147483647, %v1148_v48  ;;  %977 = vpow2.f32 %v422_v50  ;;  %v952_v50 = vld [vmem:[%s1329_s3 + $0x38] sm:$0xff]  ;;  %vm480_vm9 = vcmp.ge.f32.partialorder %v1143_v43, 0.0  ;;  %vm486_vm10 = vcmp.ge.f32.partialorder %v1148_v48, 0.0 }
  0xab   : > { %v400_v55 = vsub.f32 0.0, %v384_v51  ;;  %v379_v58 = vand.u32 2147483647, %v1153_v53  ;;  %979 = vrcp.f32 %v440_v54  ;;  %708 = vmatpush.bf16.msra.mxu1 %v952_v50  ;;  %vm475_vm7 = vcmp.ge.f32.partialorder %v1153_v53, 0.0 }
  0xac   : > { %v406_v61 = vsub.f32 0.0, %v390_v52  ;;  %981 = vpow2.f32 %v434_v57 }
  0xad   : > { %v424_v60 = vmul.f32 1.442695, %v400_v55  ;;  %v395_v62 = vsub.f32 0.0, %v379_v58 }
  0xae   : > { %v358_v63 = vpop.f32.mrf.mxu2  ;;  %v436_v8 = vmul.f32 1.442695, %v406_v61 }
  0xaf   : > { %v1163_v1 = vadd.f32 %v1112_v10, %v358_v63  ;;  %v373_v2 = vpop.f32.mrf.mxu3  ;;  %v414_v4 = vmul.f32 1.442695, %v395_v62  ;;  %983 = vpow2.f32 %v424_v60  ;;  %v976_v11 = vpop.eup %975 }
  0xb0   : > { %v1167_v5 = vadd.f32 %v1112_v10, %v373_v2  ;;  %v346_v6 = vpop.f32.mrf.mxu0  ;;  %v1172_v13 = vpop.eup %977  ;;  %v442_v14 = vadd.f32 1.0, %v976_v11 }
  0xb1   : > { %v385_v9 = vand.u32 2147483647, %v1163_v1  ;;  %985 = vpow2.f32 %v414_v4  ;;  %v980_v20 = vpop.eup %979  ;;  %v1177_v23 = vadd.f32 %v1112_v10, %v346_v6  ;;  %v447_v25 = vadd.f32 1.0, %v1172_v13 }
  0xb2   : > { %987 = vrcp.f32 %v446_v0  ;;  %v391_v19 = vand.u32 2147483647, %v1167_v5  ;;  %v1179_v24 = vpop.eup %981  ;;  %v488_v57 = vmul.f32 %v980_v20, %v1145_v45  ;;  %v951_v45 = vld [vmem:[%s1329_s3 + $0x30] sm:$0xff]  ;;  %vm481_vm11 = vcmp.ge.f32.partialorder %v1163_v1, 0.0 }
  0xb3   : > { %v401_v16 = vsub.f32 0.0, %v385_v9  ;;  %989 = vrcp.f32 %v441_v3  ;;  %v380_v31 = vand.u32 2147483647, %v1177_v23  ;;  %v453_v36 = vadd.f32 1.0, %v1179_v24  ;;  %709 = vmatpush.bf16.msra.mxu1 %v951_v45 }
  0xb4   : > { %991 = vpow2.f32 %v436_v8  ;;  %v407_v26 = vsub.f32 0.0, %v391_v19  ;;  %v504_v4 = vsel %vm472_vm1, %v980_v20, %v488_v57  ;;  %vm487_vm12 = vcmp.ge.f32.partialorder %v1167_v5, 0.0 }
  0xb5   : > { %v426_v22 = vmul.f32 1.442695, %v401_v16  ;;  %993 = vrcp.f32 %v442_v14  ;;  %v1182_v29 = vpop.eup %983  ;;  %v396_v38 = vsub.f32 0.0, %v380_v31  ;;  %vm476_vm13 = vcmp.ge.f32.partialorder %v1177_v23, 0.0 }
  0xb6   : > { %v361_v27 = vpop.f32.mrf.mxu2  ;;  %v438_v34 = vmul.f32 1.442695, %v407_v26  ;;  %v448_v41 = vadd.f32 1.0, %v1182_v29  ;;  %v520_v26 = vmul.f32 %v504_v4, %v1115_v12  ;;  %vm644_vm1 = vcmask 1041409  }
  0xb7   : > { %995 = vpow2.f32 %v426_v22  ;;  %v986_v32 = vpop.eup %985  ;;  %v1189_v39 = vadd.f32 %v1112_v10, %v361_v27  ;;  %v416_v46 = vmul.f32 1.442695, %v396_v38 }
  0xb8   : > { %997 = vrcp.f32 %v452_v17  ;;  %v1185_v35 = vpop.eup %987  ;;  %v443_v37 = vadd.f32 1.0, %v986_v32  ;;  %v348_v42 = vpop.f32.mrf.mxu0 }
  0xb9   : > { %v990_v40 = vpop.eup %989  ;;  %999 = vrcp.f32 %v447_v25  ;;  %v386_v47 = vand.u32 2147483647, %v1189_v39  ;;  %v1201_v54 = vadd.f32 %v1112_v10, %v348_v42  ;;  %v494_v6 = vmul.f32 %v1185_v35, %v1156_v56  ;;  %v950_v56 = vld [vmem:[%s1329_s3 + $0x28] sm:$0xff]  ;;  %v949_v42 = vld [vmem:[%s1329_s3 + $0x20] sm:$0xff] }
  0xba   : > { %v1192_v44 = vpop.eup %991  ;;  %1001 = vrcp.f32 %v443_v37  ;;  %v489_v60 = vmul.f32 %v990_v40, %v1159_v59  ;;  %710 = vmatpush.bf16.msra.mxu1 %v950_v56  ;;  %vm482_vm15 = vcmp.ge.f32.partialorder %v1189_v39, 0.0 }
  0xbb   : > { %v994_v49 = vpop.eup %993  ;;  %1003 = vpow2.f32 %v438_v34  ;;  %v402_v52 = vsub.f32 0.0, %v386_v47  ;;  %v454_v58 = vadd.f32 1.0, %v1192_v44  ;;  %v381_v59 = vand.u32 2147483647, %v1201_v54 }
  0xbc   : > { %1005 = vrcp.f32 %v453_v36  ;;  %v490_v63 = vmul.f32 %v994_v49, %v976_v11  ;;  %v505_v9 = vsel %vm473_vm3, %v990_v40, %v489_v60  ;;  %v510_v27 = vsel %vm478_vm2, %v1185_v35, %v494_v6 }
  0xbd   : > { %v1198_v51 = vpop.eup %995  ;;  %1007 = vrcp.f32 %v448_v41  ;;  %v428_v0 = vmul.f32 1.442695, %v402_v52  ;;  %v397_v25 = vsub.f32 0.0, %v381_v59  ;;  %v521_v31 = vmul.f32 %v505_v9, %v1122_v18 }
  0xbe   : > { %v1203_v55 = vpop.eup %997  ;;  %v449_v61 = vadd.f32 1.0, %v1198_v51  ;;  %1009 = vpow2.f32 %v416_v46  ;;  %v506_v19 = vsel %vm474_vm5, %v994_v49, %v490_v63  ;;  %v363_v20 = vpop.f32.mrf.mxu2  ;;  %711 = vmatpush.bf16.msra.mxu1 %v949_v42  ;;  %vm477_vm14 = vcmp.ge.f32.partialorder %v1201_v54, 0.0 }
  0xbf   : > { %v1000_v62 = vpop.eup %999  ;;  %v522_v37 = vmul.f32 %v506_v19, %v1138_v33  ;;  %v418_v38 = vmul.f32 1.442695, %v397_v25  ;;  %v1241_v12 = vadd.f32 %v1112_v10, %v363_v20  ;;  %v500_v35 = vmul.f32 %v1203_v55, %v1169_v7 }
  0xc0   : > { %v1002_v2 = vpop.eup %1001  ;;  %1011 = vrcp.f32 %v449_v61  ;;  %v495_v11 = vmul.f32 %v1000_v62, %v1172_v13  ;;  %v526_v7 = vmul.f32 %v510_v27, %v1119_v15  ;;  %v536_v49 = vadd.f32 %v521_v31, %v520_v26 }
  0xc1   : > { %v1004_v3 = vpop.eup %1003  ;;  %1013 = vrcp.f32 %v454_v58  ;;  %v491_v14 = vmul.f32 %v1002_v2, %v986_v32  ;;  %v387_v10 = vand.u32 2147483647, %v1241_v12  ;;  %v516_v63 = vsel %vm484_vm8, %v1203_v55, %v500_v35  ;;  %v947_v55 = vld [vmem:[%s1329_s3 + $0x10] sm:$0xff] }
  0xc2   : > { %v1006_v8 = vpop.eup %1005  ;;  %v455_v16 = vadd.f32 1.0, %v1004_v3  ;;  %1015 = vpow2.f32 %v428_v0  ;;  %v511_v36 = vsel %vm479_vm4, %v1000_v62, %v495_v11  ;;  %v537_v0 = vrot.slane %v536_v49, 4 }
  0xc3   : > { %v1008_v17 = vpop.eup %1007  ;;  %v507_v13 = vsel %vm475_vm7, %v1002_v2, %v491_v14  ;;  %v501_v18 = vmul.f32 %v1006_v8, %v1179_v24  ;;  %v527_v24 = vmul.f32 %v511_v36, %v1131_v28  ;;  %v948_v28 = vld [vmem:[%s1329_s3 + $0x18] sm:$0xff]  ;;  %v532_v9 = vmul.f32 %v516_v63, %v1126_v21 }
  0xc4   : > { %v1226_v22 = vpop.eup %1009  ;;  %1017 = vrcp.f32 %v455_v16  ;;  %v523_v32 = vmul.f32 %v507_v13, %v1153_v53  ;;  %v496_v41 = vmul.f32 %v1008_v17, %v1182_v29  ;;  %712 = vmatpush.bf16.msra.mxu1 %v948_v28  ;;  %vm483_vm0 = vcmp.ge.f32.partialorder %v1241_v12, 0.0 }
  0xc5   : > { %v444_v53 = vadd.f32 1.0, %v1226_v22  ;;  %1019 = vpow2.f32 %v418_v38  ;;  %v517_v57 = vsel %vm485_vm6, %v1006_v8, %v501_v18  ;;  %v557_v45 = vadd.f32 %v527_v24, %v526_v7 }
  0xc6   : > { %v1012_v34 = vpop.eup %1011  ;;  %v543_v46 = vadd.f32 %v523_v32, %v522_v37  ;;  %v512_v58 = vsel %vm480_vm9, %v1008_v17, %v496_v41  ;;  %v538_v17 = vadd.f32 %v537_v0, %v536_v49  ;;  %vm646_vm2 = vcmask 1042434  }
  0xc7   : > { %v1014_v40 = vpop.eup %1013  ;;  %v497_v33 = vmul.f32 %v1012_v34, %v1198_v51  ;;  %v403_v51 = vsub.f32 0.0, %v387_v10  ;;  %1021 = vrcp.f32 %v444_v53  ;;  %v528_v4 = vmul.f32 %v512_v58, %v1143_v43 }
  0xc8   : > { %v1253_v47 = vpop.eup %1015  ;;  %v502_v50 = vmul.f32 %v1014_v40, %v1192_v44  ;;  %v544_v60 = vrot.slane %v543_v46, 4  ;;  %713 = vmatpush.bf16.msra.mxu1 %v947_v55  ;;  %v539_v32 = vrot.slane %v538_v17, 2  ;;  %vm648_vm3 = vcmask 1043459  }
  0xc9   : > { %v513_v52 = vsel %vm481_vm11, %v1012_v34, %v497_v33  ;;  %v450_v44 = vadd.f32 1.0, %v1253_v47  ;;  %v430_v62 = vmul.f32 1.442695, %v403_v51  ;;  %vm650_vm4 = vcmask 1044484  }
  0xca   : > { %v1018_v29 = vpop.eup %1017  ;;  %v529_v61 = vmul.f32 %v513_v52, %v1163_v1  ;;  %v518_v6 = vsel %vm486_vm10, %v1014_v40, %v502_v50  ;;  %v545_v11 = vadd.f32 %v544_v60, %v543_v46  ;;  %v540_v41 = vadd.f32 %v539_v32, %v538_v17 }
  0xcb   : > { %v503_v15 = vmul.f32 %v1018_v29, %v1004_v3  ;;  %v1020_v59 = vpop.eup %1019  ;;  %v533_v3 = vmul.f32 %v517_v57, %v1134_v30  ;;  %1023 = vpow2.f32 %v430_v62  ;;  %v558_v30 = vrot.slane %v557_v45, 4 }
  0xcc   : > { %v445_v8 = vadd.f32 1.0, %v1020_v59  ;;  %v564_v14 = vadd.f32 %v529_v61, %v528_v4  ;;  %1025 = vrcp.f32 %v450_v44  ;;  %v534_v43 = vmul.f32 %v518_v6, %v1148_v48  ;;  %v945_v48 = vld [vmem:[%s1329_s3] sm:$0xff] }
  0xcd   : > { %v519_v2 = vsel %vm487_vm12, %v1018_v29, %v503_v15  ;;  %v1022_v16 = vpop.eup %1021  ;;  %v578_v19 = vadd.f32 %v533_v3, %v532_v9  ;;  %v546_v13 = vrot.slane %v545_v11, 2  ;;  %v559_v26 = vadd.f32 %v558_v30, %v557_v45 }
  0xce   : > { %v535_v1 = vmul.f32 %v519_v2, %v1167_v5  ;;  %1027 = vrcp.f32 %v445_v8  ;;  %v946_v5 = vld [vmem:[%s1329_s3 + $0x8] sm:$0xff]  ;;  %v565_v25 = vrot.slane %v564_v14, 4  ;;  %v492_v21 = vmul.f32 %v1022_v16, %v1226_v22 }
  0xcf   : > { %714 = vmatpush.bf16.msra.mxu1 %v946_v5  ;;  %v579_v34 = vrot.slane %v578_v19, 4  ;;  %v547_v38 = vadd.f32 %v546_v13, %v545_v11  ;;  %v560_v22 = vrot.slane %v559_v26, 2  ;;  %v541_v51 = vrot.slane %v540_v41, 1 }
  0xd0   : > { %v585_v20 = vadd.f32 %v535_v1, %v534_v43  ;;  %v566_v40 = vadd.f32 %v565_v25, %v564_v14  ;;  %v508_v35 = vsel %vm476_vm13, %v1022_v16, %v492_v21  ;;  %vm652_vm5 = vcmask 1045509  }
  0xd1   : > { %v1024_v56 = vpop.eup %1023  ;;  %v580_v53 = vadd.f32 %v579_v34, %v578_v19  ;;  %v524_v10 = vmul.f32 %v508_v35, %v1177_v23  ;;  %v548_v49 = vrot.slane %v547_v38, 1  ;;  %v561_v50 = vadd.f32 %v560_v22, %v559_v26 }
  0xd2   : > { %v451_v27 = vadd.f32 1.0, %v1024_v56  ;;  %v1026_v31 = vpop.eup %1025  ;;  %v586_v37 = vrot.slane %v585_v20, 4  ;;  %v567_v24 = vrot.slane %v566_v40, 2  ;;  %v542_v0 = vadd.f32 %v541_v51, %v540_v41 }
  0xd3   : > { %715 = vmatpush.bf16.msra.mxu1 %v945_v48  ;;  %v498_v42 = vmul.f32 %v1026_v31, %v1253_v47  ;;  %v581_v57 = vrot.slane %v580_v53, 2  ;;  %v549_v47 = vadd.f32 %v548_v49, %v547_v38  ;;  %v562_v44 = vrot.slane %v561_v50, 1 }
  0xd4   : > { %v1028_v36 = vpop.eup %1027  ;;  %1029 = vrcp.f32 %v451_v27  ;;  %v587_v33 = vadd.f32 %v586_v37, %v585_v20  ;;  %v568_v61 = vadd.f32 %v567_v24, %v566_v40  ;;  %v592_v9 = vmul.f32 0.0625, %v542_v0 }
  0xd5   : > { %v493_v18 = vmul.f32 %v1028_v36, %v1020_v59  ;;  %v514_v58 = vsel %vm482_vm15, %v1026_v31, %v498_v42  ;;  %v582_v45 = vadd.f32 %v581_v57, %v580_v53  ;;  %v593_v4 = vmul.f32 0.0625, %v549_v47 }
  0xd6   : > { %v588_v28 = vrot.slane %v587_v33, 2  ;;  %v569_v6 = vrot.slane %v568_v61, 1  ;;  %v563_v1 = vadd.f32 %v562_v44, %v561_v50  ;;  %v600_v19 = vpack.c.bf16 %v592_v9, %v592_v9 }
  0xd7   : > { %v509_v46 = vsel %vm477_vm14, %v1028_v36, %v493_v18  ;;  %v583_v11 = vrot.slane %v582_v45, 1  ;;  %v601_v43 = vpack.c.bf16 %v593_v4, %v593_v4  ;;  %vm654_vm6 = vcmask 1046534  }
  0xd8   : > { %v525_v7 = vmul.f32 %v509_v46, %v1201_v54  ;;  %v530_v54 = vmul.f32 %v514_v58, %v1189_v39  ;;  %v589_v3 = vadd.f32 %v588_v28, %v587_v33  ;;  %v570_v39 = vadd.f32 %v569_v6, %v568_v61  ;;  %v966_v58 = vld [vmem:[%s1330_s4] ss:$0 sm:$0xff] }
  0xd9   : > { %v595_v5 = vmul.f32 0.0625, %v563_v1  ;;  %v584_v20 = vadd.f32 %v583_v11, %v582_v45  ;;  %v637_v21 = vunpack.c.l.b16 %v601_v43  ;;  %v636_v32 = vunpack.c.l.b16 %v600_v19 }
  0xda   : > { %v1030_v29 = vpop.eup %1029  ;;  %v550_v52 = vadd.f32 %v525_v7, %v524_v10  ;;  %v590_v30 = vrot.slane %v589_v3, 1  ;;  %v596_v26 = vmul.f32 0.0625, %v570_v39  ;;  %vm656_vm7 = vcmask 1047559  }
  0xdb   : > { %v499_v15 = vmul.f32 %v1030_v29, %v1024_v56  ;;  %v603_v27 = vpack.c.bf16 %v595_v5, %v595_v5  ;;  %v598_v34 = vmul.f32 0.0625, %v584_v20  ;;  %v645_v35 = vsel %vm644_vm1, %v637_v21, %v636_v32 }
  0xdc   : > { %v551_v60 = vrot.slane %v550_v52, 4  ;;  %v591_v25 = vadd.f32 %v590_v30, %v589_v3  ;;  %v604_v40 = vpack.c.bf16 %v596_v26, %v596_v26 }
  0xdd   : > { %v515_v23 = vsel %vm483_vm0, %v1030_v29, %v499_v15  ;;  %v639_v18 = vunpack.c.l.b16 %v603_v27  ;;  %v606_v53 = vpack.c.bf16 %v598_v34, %v598_v34 }
  0xde   : > { %v552_v62 = vadd.f32 %v551_v60, %v550_v52  ;;  %v531_v63 = vmul.f32 %v515_v23, %v1241_v12  ;;  %v599_v38 = vmul.f32 0.0625, %v591_v25  ;;  %v640_v10 = vunpack.c.l.b16 %v604_v40 }
  0xdf   : > { %v642_v49 = vunpack.c.l.b16 %v606_v53 }
  0xe0   : > { %v553_v2 = vrot.slane %v552_v62, 2  ;;  %v571_v59 = vadd.f32 %v531_v63, %v530_v54  ;;  %v607_v46 = vpack.c.bf16 %v599_v38, %v599_v38 }
  0xe2   : > { %v554_v8 = vadd.f32 %v553_v2, %v552_v62  ;;  %v572_v55 = vrot.slane %v571_v59, 4  ;;  %v643_v29 = vunpack.c.l.b16 %v607_v46  ;;  %v731_v62 = vlaneseq }
  0xe4   : > { %v555_v14 = vrot.slane %v554_v8, 1  ;;  %v573_v16 = vadd.f32 %v572_v55, %v571_v59  ;;  %v1301_v63 = vand.u32 127, %v731_v62 }
  0xe6   : > { %v556_v17 = vadd.f32 %v555_v14, %v554_v8  ;;  %v574_v12 = vrot.slane %v573_v16, 2  ;;  %vm734_vm9 = vcmp.lt.s32.totalorder %v1301_v63, 5  ;;  %vm760_vm0 = vcmp.ge.s32.totalorder %v1301_v63, 5 }
  0xe7   : > { %vm761_vm1 = vcmp.lt.s32.totalorder %v1301_v63, 9 }
  0xe8   : > { %v594_v56 = vmul.f32 0.0625, %v556_v17  ;;  %v575_v13 = vadd.f32 %v574_v12, %v573_v16 }
  0xea   : > { %v602_v48 = vpack.c.bf16 %v594_v56, %v594_v56  ;;  %v576_v31 = vrot.slane %v575_v13, 1 }
  0xec   : > { %v638_v36 = vunpack.c.l.b16 %v602_v48  ;;  %v577_v37 = vadd.f32 %v576_v31, %v575_v13 }
  0xee   : > { %v597_v22 = vmul.f32 0.0625, %v577_v37  ;;  %v647_v41 = vsel %vm646_vm2, %v638_v36, %v645_v35 }
  0xef   : > { %v649_v33 = vsel %vm648_vm3, %v639_v18, %v647_v41  ;;  %vm787_vm3 = vcmp.ge.s32.totalorder %v1301_v63, 9 }
  0xf0   : > { %v605_v42 = vpack.c.bf16 %v597_v22, %v597_v22  ;;  %v651_v24 = vsel %vm650_vm4, %v640_v10, %v649_v33  ;;  %vm788_vm4 = vcmp.lt.s32.totalorder %v1301_v63, 12 }
  0xf2   : > { %v641_v7 = vunpack.c.l.b16 %v605_v42 }
  0xf4   : > { %v653_v50 = vsel %vm652_vm5, %v641_v7, %v651_v24 }
  0xf5   : > { %v655_v52 = vsel %vm654_vm6, %v642_v49, %v653_v50  ;;  %vm762_vm6 = vmand %vm760_vm0, %vm761_vm1 }
  0xf6   : > { %v657_v51 = vsel %vm656_vm7, %v643_v29, %v655_v52 }
  0xf7   : > { %v658_v57 = vpack.c.b16 %v657_v51, %v657_v51 }
  0xf9   : > { %716 = vmatmul.bf16.vlgmr.msra.gmra.mxu1 %v658_v57 }
 0x176   : > { %v717_v15 = vpop.f32.mrf.mxu1 }
 0x177   : > { %v718_v28 = vadd.f32 %v966_v58, %v717_v15 }
 0x179   : > { %v721_v60 = vand.u32 2147483647, %v718_v28  ;;  %vm727_vm8 = vcmp.ge.f32.partialorder %v718_v28, 0.0 }
 0x17b   : > { %v722_v47 = vsub.f32 0.0, %v721_v60 }
 0x17d   : > { %v723_v61 = vmul.f32 1.442695, %v722_v47 }
 0x17e   : > { %v719_v23 = vpop.f32.mrf.mxu1 }
 0x17f   : > { %1031 = vpow2.f32 %v723_v61 }
 0x185   : > { %v1032_v44 = vpop.eup %1031 }
 0x186   : > { %v725_v54 = vadd.f32 1.0, %v1032_v44 }
 0x188   : > { %1033 = vrcp.f32 %v725_v54 }
 0x18e   : > { %v1034_v0 = vpop.eup %1033 }
 0x18f   : > { %v728_v45 = vmul.f32 %v1034_v0, %v1032_v44 }
 0x191   : > { %v729_v2 = vsel %vm727_vm8, %v1034_v0, %v728_v45  ;;  %vm789_vm8 = vmand %vm787_vm3, %vm788_vm4 }
 0x192   : > { %v1304_v59 = vmul.f32 %v729_v2, %v718_v28 }
 0x194   : > { %v736_v3 = vsel %vm734_vm9, %v1304_v59, -inf  ;;  %v763_v55 = vand.u32 2147483647, %v1304_v59  ;;  %vm783_vm7 = vcmp.ge.f32.partialorder %v1304_v59, 0.0 }
 0x195   : > { %737 = vmax.xlane.f32.xlu0 %v736_v3 }
 0x196   : > { %v764_v9 = vsub.f32 0.0, %v763_v55 }
 0x198   : > { %v765_v11 = vmul.f32 1.442695, %v764_v9 }
 0x208   : > { %v738_v4 = vpop.xlane.xlu0 %737 }
 0x209   : > { %v739_v6 = vsub.f32 %v736_v3, %v738_v4 }
 0x20b   : > { %v740_v1 = vmul.f32 1.442695, %v739_v6 }
 0x20d   : > { %1035 = vpow2.f32 %v740_v1 }
 0x20e   : > { %1037 = vpow2.f32 %v765_v11 }
 0x213   : > { %v1036_v8 = vpop.eup %1035 }
 0x214   : > { %742 = vadd.xlane.f32.xlu0 %v1036_v8  ;;  %v1038_v14 = vpop.eup %1037 }
 0x215   : > { %v767_v16 = vadd.f32 1.0, %v1038_v14 }
 0x217   : > { %1039 = vrcp.f32 %v767_v16  ;;  %v779_v19 = vand.u32 2147483648, %v767_v16  ;;  %vm773_vm11 = vweird.f32 %v767_v16  ;;  %v777_v56 = vand.u32 2147483647, %v767_v16 }
 0x219   : > { %v780_v21 = vor.u32 1.1754944e-38, %v779_v19  ;;  %vm778_vm13 = vcmp.eq.f32.partialorder %v777_v56, 8.507059e+37 }
 0x21d   : > { %v1040_v30 = vpop.eup %1039 }
 0x21e   : > { %v769_v43 = vmul.f32 %v1040_v30, %v767_v16  ;;  %vm774_vm10 = vweird.f32 %v1040_v30 }
 0x21f   : > { %vm775_vm12 = vmor %vm773_vm11, %vm774_vm10 }
 0x220   : > { %v770_v39 = vsub.f32 1.0, %v769_v43 }
 0x222   : > { %v771_v17 = vmul.f32 %v1040_v30, %v770_v39 }
 0x224   : > { %v772_v12 = vadd.f32 %v1040_v30, %v771_v17 }
 0x226   : > { %v776_v25 = vsel %vm775_vm12, %v1040_v30, %v772_v12 }
 0x227   : > { %v781_v48 = vsel %vm778_vm13, %v780_v21, %v776_v25 }
 0x228   : > { %v784_v36 = vmul.f32 %v1038_v14, %v781_v48 }
 0x22a   : > { %v785_v18 = vsel %vm783_vm7, %v781_v48, %v784_v36 }
 0x287   : > { %v743_v5 = vpop.xlane.xlu0 %742 }
 0x288   : > { %1041 = vrcp.f32 %v743_v5  ;;  %v755_v27 = vand.u32 2147483648, %v743_v5  ;;  %v753_v32 = vand.u32 2147483647, %v743_v5  ;;  %vm749_vm15 = vweird.f32 %v743_v5 }
 0x28a   : > { %v756_v37 = vor.u32 1.1754944e-38, %v755_v27  ;;  %vm754_vm5 = vcmp.eq.f32.partialorder %v753_v32, 8.507059e+37 }
 0x28e   : > { %v1042_v20 = vpop.eup %1041 }
 0x28f   : > { %v745_v13 = vmul.f32 %v1042_v20, %v743_v5  ;;  %vm750_vm14 = vweird.f32 %v1042_v20 }
 0x290   : > { %vm751_vm2 = vmor %vm749_vm15, %vm750_vm14 }
 0x291   : > { %v746_v26 = vsub.f32 1.0, %v745_v13 }
 0x293   : > { %v747_v31 = vmul.f32 %v1042_v20, %v746_v26 }
 0x295   : > { %v748_v34 = vadd.f32 %v1042_v20, %v747_v31 }
 0x297   : > { %v752_v38 = vsel %vm751_vm2, %v1042_v20, %v748_v34 }
 0x298   : > { %v757_v40 = vsel %vm754_vm5, %v756_v37, %v752_v38 }
 0x299   : > { %v758_v35 = vmul.f32 %v1036_v8, %v757_v40 }
 0x29b   : > { %v759_v22 = vsel %vm734_vm9, %v758_v35, 0.0 }
 0x29c   : > { %v786_v41 = vsel %vm762_vm6, %v785_v18, %v759_v22 }
 0x29d   : > { %v790_v53 = vsel %vm789_vm8, %v1304_v59, %v786_v41 }
 0x29e   : > { %791 = vst [vmem:[%s224_s29] sm:$0xff] %v790_v53 }
 0x29f PF: > { %s15_s18 = sadd.s32 1, %s1049_s18  }
 0x2a0   : > { %p12_p5 = scmp.ge.s32.totalorder %s15_s18, 4  }
 0x2a2   :  { %14 = sbr.rel (!%p12_p5) target bundleno = 1 (0x1), region = 70 }

</bundles_post_ra>
